<compile_context>
chip_gen: v7x
topology: tpu7x:2x2x1
jax: 0.10.0
libtpu: 0.0.40
codegen_flags: <defaults>
</compile_context>

<pallas_src>
import jax
import jax.numpy as jnp
from jax.experimental import pallas as pl
from jax.experimental.pallas import tpu as pltpu


# ----------------------------------------------------------------------------
# Fused kernel factory: num_layers LSTM layers + MLP head, all in one body.
# ----------------------------------------------------------------------------
def make_fused_kernel(num_layers, T, B, H, has_features):
    def kernel(*args):
        idx = 0
        x_ref = args[idx]; idx += 1                     # (T*B, D) time-major flat
        if has_features:
            x2_ref = args[idx]; idx += 1                # (B, F)

        lstm_refs = []
        for _ in range(num_layers):
            lstm_refs.append((args[idx], args[idx + 1], args[idx + 2]))
            idx += 3                                    # (d_in,4H), (H,4H), (1,4H)

        if has_features:
            (w1_ref, b1f_ref,
             g1a_ref, be1a_ref, g1b_ref, be1b_ref,
             w2a_ref, w2b_ref, b2_ref,
             g2_ref, be2_ref,
             w3_ref, b3_ref) = args[idx:idx + 13]
            idx += 13
        else:
            w3_ref, b3_ref = args[idx:idx + 2]
            idx += 2
        out_ref = args[idx]

        # ------------------------------------------------------------------
        # Stacked LSTM.  `seq` holds the layer input for all timesteps,
        # flattened time-major: row t*B + b  <->  (batch b, timestep t).
        # ------------------------------------------------------------------
        seq = x_ref[...]                                # (T*B, d_in)
        h_last = None
        for layer_idx, (wih_ref, whh_ref, b_ref) in enumerate(lstm_refs):
            # Hoisted input projection for every timestep at once (one MXU push
            # instead of T tiny ones on the serial dependence chain).
            xproj = (jnp.dot(seq, wih_ref[...],
                             preferred_element_type=jnp.float32)
                     + b_ref[...])                      # (T*B, 4H)

            h = jnp.zeros((B, H), jnp.float32)
            c = jnp.zeros((B, H), jnp.float32)
            hs = []
            for t in range(T):                          # fully unrolled (T static)
                gates = (xproj[t * B:(t + 1) * B, :]
                         + jnp.dot(h, whh_ref[...],
                                   preferred_element_type=jnp.float32))  # (B, 4H)
                # Full-width EUP passes, slice afterwards (gate order i,f,g,o).
                sg = jax.nn.sigmoid(gates)
                th = jnp.tanh(gates)
                i_g = sg[:, 0 * H:1 * H]
                f_g = sg[:, 1 * H:2 * H]
                g_g = th[:, 2 * H:3 * H]
                o_g = sg[:, 3 * H:4 * H]
                c = f_g * c + i_g * g_g
                h = o_g * jnp.tanh(c)
                hs.append(h)
            h_last = h
            if layer_idx + 1 < num_layers:
                # Next layer's input: stays in vregs/VMEM, never touches HBM.
                seq = jnp.concatenate(hs, axis=0)       # (T*B, H)

        # ------------------------------------------------------------------
        # MLP head (eval-mode BN: mean=0, var=1; dropout = identity).
        # cat([h_last, fc1(x2)]) is expressed via split BN1/fc2 parameters.
        # ------------------------------------------------------------------
        if has_features:
            eps = 1e-5
            inv = 1.0 / jnp.sqrt(1.0 + eps)
            f1 = (jnp.dot(x2_ref[...], w1_ref[...],
                          preferred_element_type=jnp.float32) + b1f_ref[...])
            za = jnp.maximum(h_last * inv * g1a_ref[...] + be1a_ref[...], 0.0)
            zb = jnp.maximum(f1 * inv * g1b_ref[...] + be1b_ref[...], 0.0)
            z2 = (jnp.dot(za, w2a_ref[...], preferred_element_type=jnp.float32)
                  + jnp.dot(zb, w2b_ref[...], preferred_element_type=jnp.float32)
                  + b2_ref[...])
            z2 = jnp.maximum(z2 * inv * g2_ref[...] + be2_ref[...], 0.0)
            out_ref[...] = (jnp.dot(z2, w3_ref[...],
                                    preferred_element_type=jnp.float32)
                            + b3_ref[...])
        else:
            out_ref[...] = (jnp.dot(h_last, w3_ref[...],
                                    preferred_element_type=jnp.float32)
                            + b3_ref[...])

    return kernel


# ----------------------------------------------------------------------------
# Full forward (single pallas_call, no grid: everything fits in VMEM).
# ----------------------------------------------------------------------------
def lstm_variant_forward(x1, x2, params, *, input_size, hidden_size, num_layers,
                         feature_size, output_size):
    B = x1.shape[0]
    x1 = x1.astype(jnp.float32).reshape(B, -1, input_size)     # (B, T, D)
    T = x1.shape[1]
    # Time-major flatten so row index = t*B + b  (matches in-kernel layout).
    x_flat = jnp.transpose(x1, (1, 0, 2)).reshape(T * B, input_size)

    has_features = feature_size != 0
    args = [x_flat]
    if has_features:
        args.append(x2.astype(jnp.float32).reshape(B, -1))      # (B, F)
    for layer in range(num_layers):
        args += [params["lstm_wih"][layer],
                 params["lstm_whh"][layer],
                 params["lstm_b"][layer]]
    if has_features:
        args += [params["fc1_w"], params["fc1_b"],
                 params["bn1_g_a"], params["bn1_b_a"],
                 params["bn1_g_b"], params["bn1_b_b"],
                 params["fc2_w_a"], params["fc2_w_b"], params["fc2_b"],
                 params["bn2_g"], params["bn2_b"],
                 params["fc3_w"], params["fc3_b"]]
    else:
        args += [params["fc3_w"], params["fc3_b"]]

    kernel = make_fused_kernel(num_layers, T, B, hidden_size, has_features)
    return pl.pallas_call(
        kernel,
        out_shape=jax.ShapeDtypeStruct((B, output_size), jnp.float32),
    )(*args)


# ----------------------------------------------------------------------------
# Deterministic parameter construction (mirrors nn.LSTM / nn.Linear / BN shapes)
# ----------------------------------------------------------------------------
def init_params(key, *, input_size, hidden_size, num_layers, feature_size,
                output_size, hidden_size_f):
    def nrm(k, shape, scale=0.1):
        return scale * jax.random.normal(k, shape, jnp.float32)

    keys = jax.random.split(key, 4 * num_layers + 12)
    ki = iter(keys)

    lstm_wih, lstm_whh, lstm_b = [], [], []
    for layer in range(num_layers):
        d_in = input_size if layer == 0 else hidden_size
        # PyTorch stores (4H, d_in)/(4H, H); we keep them transposed for x @ W.
        lstm_wih.append(nrm(next(ki), (d_in, 4 * hidden_size)))
        lstm_whh.append(nrm(next(ki), (hidden_size, 4 * hidden_size)))
        b_ih = nrm(next(ki), (4 * hidden_size,))
        b_hh = nrm(next(ki), (4 * hidden_size,))
        lstm_b.append((b_ih + b_hh).reshape(1, 4 * hidden_size))

    cat = hidden_size + hidden_size_f
    fc2_w = nrm(next(ki), (cat, hidden_size))                   # (in, out) layout
    bn1_g = 1.0 + nrm(next(ki), (cat,), 0.01)
    bn1_b = nrm(next(ki), (cat,), 0.01)

    params = dict(
        lstm_wih=lstm_wih, lstm_whh=lstm_whh, lstm_b=lstm_b,
        fc1_w=nrm(next(ki), (feature_size, hidden_size_f)),
        fc1_b=nrm(next(ki), (1, hidden_size_f)),
        bn1_g_a=bn1_g[:hidden_size].reshape(1, hidden_size),
        bn1_b_a=bn1_b[:hidden_size].reshape(1, hidden_size),
        bn1_g_b=bn1_g[hidden_size:].reshape(1, hidden_size_f),
        bn1_b_b=bn1_b[hidden_size:].reshape(1, hidden_size_f),
        fc2_w_a=fc2_w[:hidden_size, :],
        fc2_w_b=fc2_w[hidden_size:, :],
        fc2_b=nrm(next(ki), (1, hidden_size)),
        bn2_g=(1.0 + nrm(next(ki), (1, hidden_size), 0.01)),
        bn2_b=nrm(next(ki), (1, hidden_size), 0.01),
        fc3_w=nrm(next(ki), (hidden_size, output_size)),
        fc3_b=nrm(next(ki), (1, output_size)),
    )
    return params


if __name__ == "__main__":
    INPUT_SIZE = 4
    HIDDEN_SIZE = 32
    NUM_LAYERS = 2
    FEATURE_SIZE = 6
    OUTPUT_SIZE = 5
    HIDDEN_SIZE_F = 16
    B, T = 2, 8

    root = jax.random.PRNGKey(0)
    k_params, k_x1, k_x2 = jax.random.split(root, 3)

    params = init_params(
        k_params,
        input_size=INPUT_SIZE, hidden_size=HIDDEN_SIZE, num_layers=NUM_LAYERS,
        feature_size=FEATURE_SIZE, output_size=OUTPUT_SIZE,
        hidden_size_f=HIDDEN_SIZE_F,
    )

    x1 = jax.random.normal(k_x1, (B, T, INPUT_SIZE), jnp.float32)   # sequence input
    x2 = jax.random.normal(k_x2, (B, FEATURE_SIZE), jnp.float32)    # feature input

    out = lstm_variant_forward(
        x1, x2, params,
        input_size=INPUT_SIZE, hidden_size=HIDDEN_SIZE,
        num_layers=NUM_LAYERS, feature_size=FEATURE_SIZE,
        output_size=OUTPUT_SIZE,
    )
    out = jax.block_until_ready(out)
    assert out.shape == (B, OUTPUT_SIZE), out.shape
    print("KERNEL_OK")
</pallas_src>

<mosaic_0001>
module attributes {stable_mosaic.version = 11 : i64} {
  func.func @kernel(%arg0: memref<16x4xf32, #tpu.memory_space<vmem>>, %arg1: memref<2x6xf32, #tpu.memory_space<vmem>>, %arg2: memref<4x128xf32, #tpu.memory_space<vmem>>, %arg3: memref<32x128xf32, #tpu.memory_space<vmem>>, %arg4: memref<1x128xf32, #tpu.memory_space<vmem>>, %arg5: memref<32x128xf32, #tpu.memory_space<vmem>>, %arg6: memref<32x128xf32, #tpu.memory_space<vmem>>, %arg7: memref<1x128xf32, #tpu.memory_space<vmem>>, %arg8: memref<6x16xf32, #tpu.memory_space<vmem>>, %arg9: memref<1x16xf32, #tpu.memory_space<vmem>>, %arg10: memref<1x32xf32, #tpu.memory_space<vmem>>, %arg11: memref<1x32xf32, #tpu.memory_space<vmem>>, %arg12: memref<1x16xf32, #tpu.memory_space<vmem>>, %arg13: memref<1x16xf32, #tpu.memory_space<vmem>>, %arg14: memref<32x32xf32, #tpu.memory_space<vmem>>, %arg15: memref<16x32xf32, #tpu.memory_space<vmem>>, %arg16: memref<1x32xf32, #tpu.memory_space<vmem>>, %arg17: memref<1x32xf32, #tpu.memory_space<vmem>>, %arg18: memref<1x32xf32, #tpu.memory_space<vmem>>, %arg19: memref<32x5xf32, #tpu.memory_space<vmem>>, %arg20: memref<1x5xf32, #tpu.memory_space<vmem>>, %arg21: memref<2x5xf32, #tpu.memory_space<vmem>>) attributes {dimension_semantics = [], scalar_prefetch = 0 : i64, scratch_operands = 0 : i64, tpu.core_type = #tpu.core_type<tc>} {
    %c0 = arith.constant 0 : index
    %c0_0 = arith.constant 0 : index
    %0 = vector.load %arg0[%c0, %c0_0] : memref<16x4xf32, #tpu.memory_space<vmem>>, vector<16x4xf32>
    %c0_1 = arith.constant 0 : index
    %c0_2 = arith.constant 0 : index
    %1 = vector.load %arg2[%c0_1, %c0_2] : memref<4x128xf32, #tpu.memory_space<vmem>>, vector<4x128xf32>
    %cst = arith.constant dense<0.000000e+00> : vector<16x128xf32>
    %2 = tpu.matmul %0, %1, %cst {dimension_numbers = #tpu.dot_dimension_numbers<[1], [0], [0], [1], [0, 0, 1, 1], [], []>} : vector<16x4xf32>, vector<4x128xf32>, vector<16x128xf32> -> vector<16x128xf32>
    %c0_3 = arith.constant 0 : index
    %c0_4 = arith.constant 0 : index
    %3 = vector.load %arg4[%c0_3, %c0_4] : memref<1x128xf32, #tpu.memory_space<vmem>>, vector<1x128xf32>
    %4 = vector.broadcast %3 : vector<1x128xf32> to vector<16x128xf32>
    %5 = arith.addf %2, %4 : vector<16x128xf32>
    %cst_5 = arith.constant 0.000000e+00 : f32
    %6 = vector.broadcast %cst_5 : f32 to vector<2x32xf32>
    %cst_6 = arith.constant 0.000000e+00 : f32
    %7 = vector.broadcast %cst_6 : f32 to vector<2x32xf32>
    %8 = vector.extract_strided_slice %5 {offsets = [0, 0], sizes = [2, 128], strides = [1, 1]} : vector<16x128xf32> to vector<2x128xf32>
    %c0_7 = arith.constant 0 : index
    %c0_8 = arith.constant 0 : index
    %9 = vector.load %arg3[%c0_7, %c0_8] : memref<32x128xf32, #tpu.memory_space<vmem>>, vector<32x128xf32>
    %cst_9 = arith.constant dense<0.000000e+00> : vector<2x128xf32>
    %10 = tpu.matmul %6, %9, %cst_9 {dimension_numbers = #tpu.dot_dimension_numbers<[1], [0], [0], [1], [0, 0, 1, 1], [], []>} : vector<2x32xf32>, vector<32x128xf32>, vector<2x128xf32> -> vector<2x128xf32>
    %11 = arith.addf %8, %10 : vector<2x128xf32>
    %12 = arith.negf %11 : vector<2x128xf32>
    %13 = math.exp %12 : vector<2x128xf32>
    %cst_10 = arith.constant 1.000000e+00 : f32
    %14 = vector.broadcast %cst_10 : f32 to vector<2x128xf32>
    %15 = arith.addf %14, %13 : vector<2x128xf32>
    %16 = arith.divf %14, %15 : vector<2x128xf32>
    %17 = math.tanh %11 : vector<2x128xf32>
    %18 = vector.extract_strided_slice %16 {offsets = [0, 0], sizes = [2, 32], strides = [1, 1]} : vector<2x128xf32> to vector<2x32xf32>
    %19 = vector.extract_strided_slice %16 {offsets = [0, 32], sizes = [2, 32], strides = [1, 1]} : vector<2x128xf32> to vector<2x32xf32>
    %20 = vector.extract_strided_slice %17 {offsets = [0, 64], sizes = [2, 32], strides = [1, 1]} : vector<2x128xf32> to vector<2x32xf32>
    %21 = vector.extract_strided_slice %16 {offsets = [0, 96], sizes = [2, 32], strides = [1, 1]} : vector<2x128xf32> to vector<2x32xf32>
    %22 = arith.mulf %19, %7 : vector<2x32xf32>
    %23 = arith.mulf %18, %20 : vector<2x32xf32>
    %24 = arith.addf %22, %23 : vector<2x32xf32>
    %25 = math.tanh %24 : vector<2x32xf32>
    %26 = arith.mulf %21, %25 : vector<2x32xf32>
    %27 = vector.extract_strided_slice %5 {offsets = [2, 0], sizes = [2, 128], strides = [1, 1]} : vector<16x128xf32> to vector<2x128xf32>
    %c0_11 = arith.constant 0 : index
    %c0_12 = arith.constant 0 : index
    %28 = vector.load %arg3[%c0_11, %c0_12] : memref<32x128xf32, #tpu.memory_space<vmem>>, vector<32x128xf32>
    %cst_13 = arith.constant dense<0.000000e+00> : vector<2x128xf32>
    %29 = tpu.matmul %26, %28, %cst_13 {dimension_numbers = #tpu.dot_dimension_numbers<[1], [0], [0], [1], [0, 0, 1, 1], [], []>} : vector<2x32xf32>, vector<32x128xf32>, vector<2x128xf32> -> vector<2x128xf32>
    %30 = arith.addf %27, %29 : vector<2x128xf32>
    %31 = arith.negf %30 : vector<2x128xf32>
    %32 = math.exp %31 : vector<2x128xf32>
    %cst_14 = arith.constant 1.000000e+00 : f32
    %33 = vector.broadcast %cst_14 : f32 to vector<2x128xf32>
    %34 = arith.addf %33, %32 : vector<2x128xf32>
    %35 = arith.divf %33, %34 : vector<2x128xf32>
    %36 = math.tanh %30 : vector<2x128xf32>
    %37 = vector.extract_strided_slice %35 {offsets = [0, 0], sizes = [2, 32], strides = [1, 1]} : vector<2x128xf32> to vector<2x32xf32>
    %38 = vector.extract_strided_slice %35 {offsets = [0, 32], sizes = [2, 32], strides = [1, 1]} : vector<2x128xf32> to vector<2x32xf32>
    %39 = vector.extract_strided_slice %36 {offsets = [0, 64], sizes = [2, 32], strides = [1, 1]} : vector<2x128xf32> to vector<2x32xf32>
    %40 = vector.extract_strided_slice %35 {offsets = [0, 96], sizes = [2, 32], strides = [1, 1]} : vector<2x128xf32> to vector<2x32xf32>
    %41 = arith.mulf %38, %24 : vector<2x32xf32>
    %42 = arith.mulf %37, %39 : vector<2x32xf32>
    %43 = arith.addf %41, %42 : vector<2x32xf32>
    %44 = math.tanh %43 : vector<2x32xf32>
    %45 = arith.mulf %40, %44 : vector<2x32xf32>
    %46 = vector.extract_strided_slice %5 {offsets = [4, 0], sizes = [2, 128], strides = [1, 1]} : vector<16x128xf32> to vector<2x128xf32>
    %c0_15 = arith.constant 0 : index
    %c0_16 = arith.constant 0 : index
    %47 = vector.load %arg3[%c0_15, %c0_16] : memref<32x128xf32, #tpu.memory_space<vmem>>, vector<32x128xf32>
    %cst_17 = arith.constant dense<0.000000e+00> : vector<2x128xf32>
    %48 = tpu.matmul %45, %47, %cst_17 {dimension_numbers = #tpu.dot_dimension_numbers<[1], [0], [0], [1], [0, 0, 1, 1], [], []>} : vector<2x32xf32>, vector<32x128xf32>, vector<2x128xf32> -> vector<2x128xf32>
    %49 = arith.addf %46, %48 : vector<2x128xf32>
    %50 = arith.negf %49 : vector<2x128xf32>
    %51 = math.exp %50 : vector<2x128xf32>
    %cst_18 = arith.constant 1.000000e+00 : f32
    %52 = vector.broadcast %cst_18 : f32 to vector<2x128xf32>
    %53 = arith.addf %52, %51 : vector<2x128xf32>
    %54 = arith.divf %52, %53 : vector<2x128xf32>
    %55 = math.tanh %49 : vector<2x128xf32>
    %56 = vector.extract_strided_slice %54 {offsets = [0, 0], sizes = [2, 32], strides = [1, 1]} : vector<2x128xf32> to vector<2x32xf32>
    %57 = vector.extract_strided_slice %54 {offsets = [0, 32], sizes = [2, 32], strides = [1, 1]} : vector<2x128xf32> to vector<2x32xf32>
    %58 = vector.extract_strided_slice %55 {offsets = [0, 64], sizes = [2, 32], strides = [1, 1]} : vector<2x128xf32> to vector<2x32xf32>
    %59 = vector.extract_strided_slice %54 {offsets = [0, 96], sizes = [2, 32], strides = [1, 1]} : vector<2x128xf32> to vector<2x32xf32>
    %60 = arith.mulf %57, %43 : vector<2x32xf32>
    %61 = arith.mulf %56, %58 : vector<2x32xf32>
    %62 = arith.addf %60, %61 : vector<2x32xf32>
    %63 = math.tanh %62 : vector<2x32xf32>
    %64 = arith.mulf %59, %63 : vector<2x32xf32>
    %65 = vector.extract_strided_slice %5 {offsets = [6, 0], sizes = [2, 128], strides = [1, 1]} : vector<16x128xf32> to vector<2x128xf32>
    %c0_19 = arith.constant 0 : index
    %c0_20 = arith.constant 0 : index
    %66 = vector.load %arg3[%c0_19, %c0_20] : memref<32x128xf32, #tpu.memory_space<vmem>>, vector<32x128xf32>
    %cst_21 = arith.constant dense<0.000000e+00> : vector<2x128xf32>
    %67 = tpu.matmul %64, %66, %cst_21 {dimension_numbers = #tpu.dot_dimension_numbers<[1], [0], [0], [1], [0, 0, 1, 1], [], []>} : vector<2x32xf32>, vector<32x128xf32>, vector<2x128xf32> -> vector<2x128xf32>
    %68 = arith.addf %65, %67 : vector<2x128xf32>
    %69 = arith.negf %68 : vector<2x128xf32>
    %70 = math.exp %69 : vector<2x128xf32>
    %cst_22 = arith.constant 1.000000e+00 : f32
    %71 = vector.broadcast %cst_22 : f32 to vector<2x128xf32>
    %72 = arith.addf %71, %70 : vector<2x128xf32>
    %73 = arith.divf %71, %72 : vector<2x128xf32>
    %74 = math.tanh %68 : vector<2x128xf32>
    %75 = vector.extract_strided_slice %73 {offsets = [0, 0], sizes = [2, 32], strides = [1, 1]} : vector<2x128xf32> to vector<2x32xf32>
    %76 = vector.extract_strided_slice %73 {offsets = [0, 32], sizes = [2, 32], strides = [1, 1]} : vector<2x128xf32> to vector<2x32xf32>
    %77 = vector.extract_strided_slice %74 {offsets = [0, 64], sizes = [2, 32], strides = [1, 1]} : vector<2x128xf32> to vector<2x32xf32>
    %78 = vector.extract_strided_slice %73 {offsets = [0, 96], sizes = [2, 32], strides = [1, 1]} : vector<2x128xf32> to vector<2x32xf32>
    %79 = arith.mulf %76, %62 : vector<2x32xf32>
    %80 = arith.mulf %75, %77 : vector<2x32xf32>
    %81 = arith.addf %79, %80 : vector<2x32xf32>
    %82 = math.tanh %81 : vector<2x32xf32>
    %83 = arith.mulf %78, %82 : vector<2x32xf32>
    %84 = vector.extract_strided_slice %5 {offsets = [8, 0], sizes = [2, 128], strides = [1, 1]} : vector<16x128xf32> to vector<2x128xf32>
    %c0_23 = arith.constant 0 : index
    %c0_24 = arith.constant 0 : index
    %85 = vector.load %arg3[%c0_23, %c0_24] : memref<32x128xf32, #tpu.memory_space<vmem>>, vector<32x128xf32>
    %cst_25 = arith.constant dense<0.000000e+00> : vector<2x128xf32>
    %86 = tpu.matmul %83, %85, %cst_25 {dimension_numbers = #tpu.dot_dimension_numbers<[1], [0], [0], [1], [0, 0, 1, 1], [], []>} : vector<2x32xf32>, vector<32x128xf32>, vector<2x128xf32> -> vector<2x128xf32>
    %87 = arith.addf %84, %86 : vector<2x128xf32>
    %88 = arith.negf %87 : vector<2x128xf32>
    %89 = math.exp %88 : vector<2x128xf32>
    %cst_26 = arith.constant 1.000000e+00 : f32
    %90 = vector.broadcast %cst_26 : f32 to vector<2x128xf32>
    %91 = arith.addf %90, %89 : vector<2x128xf32>
    %92 = arith.divf %90, %91 : vector<2x128xf32>
    %93 = math.tanh %87 : vector<2x128xf32>
    %94 = vector.extract_strided_slice %92 {offsets = [0, 0], sizes = [2, 32], strides = [1, 1]} : vector<2x128xf32> to vector<2x32xf32>
    %95 = vector.extract_strided_slice %92 {offsets = [0, 32], sizes = [2, 32], strides = [1, 1]} : vector<2x128xf32> to vector<2x32xf32>
    %96 = vector.extract_strided_slice %93 {offsets = [0, 64], sizes = [2, 32], strides = [1, 1]} : vector<2x128xf32> to vector<2x32xf32>
    %97 = vector.extract_strided_slice %92 {offsets = [0, 96], sizes = [2, 32], strides = [1, 1]} : vector<2x128xf32> to vector<2x32xf32>
    %98 = arith.mulf %95, %81 : vector<2x32xf32>
    %99 = arith.mulf %94, %96 : vector<2x32xf32>
    %100 = arith.addf %98, %99 : vector<2x32xf32>
    %101 = math.tanh %100 : vector<2x32xf32>
    %102 = arith.mulf %97, %101 : vector<2x32xf32>
    %103 = vector.extract_strided_slice %5 {offsets = [10, 0], sizes = [2, 128], strides = [1, 1]} : vector<16x128xf32> to vector<2x128xf32>
    %c0_27 = arith.constant 0 : index
    %c0_28 = arith.constant 0 : index
    %104 = vector.load %arg3[%c0_27, %c0_28] : memref<32x128xf32, #tpu.memory_space<vmem>>, vector<32x128xf32>
    %cst_29 = arith.constant dense<0.000000e+00> : vector<2x128xf32>
    %105 = tpu.matmul %102, %104, %cst_29 {dimension_numbers = #tpu.dot_dimension_numbers<[1], [0], [0], [1], [0, 0, 1, 1], [], []>} : vector<2x32xf32>, vector<32x128xf32>, vector<2x128xf32> -> vector<2x128xf32>
    %106 = arith.addf %103, %105 : vector<2x128xf32>
    %107 = arith.negf %106 : vector<2x128xf32>
    %108 = math.exp %107 : vector<2x128xf32>
    %cst_30 = arith.constant 1.000000e+00 : f32
    %109 = vector.broadcast %cst_30 : f32 to vector<2x128xf32>
    %110 = arith.addf %109, %108 : vector<2x128xf32>
    %111 = arith.divf %109, %110 : vector<2x128xf32>
    %112 = math.tanh %106 : vector<2x128xf32>
    %113 = vector.extract_strided_slice %111 {offsets = [0, 0], sizes = [2, 32], strides = [1, 1]} : vector<2x128xf32> to vector<2x32xf32>
    %114 = vector.extract_strided_slice %111 {offsets = [0, 32], sizes = [2, 32], strides = [1, 1]} : vector<2x128xf32> to vector<2x32xf32>
    %115 = vector.extract_strided_slice %112 {offsets = [0, 64], sizes = [2, 32], strides = [1, 1]} : vector<2x128xf32> to vector<2x32xf32>
    %116 = vector.extract_strided_slice %111 {offsets = [0, 96], sizes = [2, 32], strides = [1, 1]} : vector<2x128xf32> to vector<2x32xf32>
    %117 = arith.mulf %114, %100 : vector<2x32xf32>
    %118 = arith.mulf %113, %115 : vector<2x32xf32>
    %119 = arith.addf %117, %118 : vector<2x32xf32>
    %120 = math.tanh %119 : vector<2x32xf32>
    %121 = arith.mulf %116, %120 : vector<2x32xf32>
    %122 = vector.extract_strided_slice %5 {offsets = [12, 0], sizes = [2, 128], strides = [1, 1]} : vector<16x128xf32> to vector<2x128xf32>
    %c0_31 = arith.constant 0 : index
    %c0_32 = arith.constant 0 : index
    %123 = vector.load %arg3[%c0_31, %c0_32] : memref<32x128xf32, #tpu.memory_space<vmem>>, vector<32x128xf32>
    %cst_33 = arith.constant dense<0.000000e+00> : vector<2x128xf32>
    %124 = tpu.matmul %121, %123, %cst_33 {dimension_numbers = #tpu.dot_dimension_numbers<[1], [0], [0], [1], [0, 0, 1, 1], [], []>} : vector<2x32xf32>, vector<32x128xf32>, vector<2x128xf32> -> vector<2x128xf32>
    %125 = arith.addf %122, %124 : vector<2x128xf32>
    %126 = arith.negf %125 : vector<2x128xf32>
    %127 = math.exp %126 : vector<2x128xf32>
    %cst_34 = arith.constant 1.000000e+00 : f32
    %128 = vector.broadcast %cst_34 : f32 to vector<2x128xf32>
    %129 = arith.addf %128, %127 : vector<2x128xf32>
    %130 = arith.divf %128, %129 : vector<2x128xf32>
    %131 = math.tanh %125 : vector<2x128xf32>
    %132 = vector.extract_strided_slice %130 {offsets = [0, 0], sizes = [2, 32], strides = [1, 1]} : vector<2x128xf32> to vector<2x32xf32>
    %133 = vector.extract_strided_slice %130 {offsets = [0, 32], sizes = [2, 32], strides = [1, 1]} : vector<2x128xf32> to vector<2x32xf32>
    %134 = vector.extract_strided_slice %131 {offsets = [0, 64], sizes = [2, 32], strides = [1, 1]} : vector<2x128xf32> to vector<2x32xf32>
    %135 = vector.extract_strided_slice %130 {offsets = [0, 96], sizes = [2, 32], strides = [1, 1]} : vector<2x128xf32> to vector<2x32xf32>
    %136 = arith.mulf %133, %119 : vector<2x32xf32>
    %137 = arith.mulf %132, %134 : vector<2x32xf32>
    %138 = arith.addf %136, %137 : vector<2x32xf32>
    %139 = math.tanh %138 : vector<2x32xf32>
    %140 = arith.mulf %135, %139 : vector<2x32xf32>
    %141 = vector.extract_strided_slice %5 {offsets = [14, 0], sizes = [2, 128], strides = [1, 1]} : vector<16x128xf32> to vector<2x128xf32>
    %c0_35 = arith.constant 0 : index
    %c0_36 = arith.constant 0 : index
    %142 = vector.load %arg3[%c0_35, %c0_36] : memref<32x128xf32, #tpu.memory_space<vmem>>, vector<32x128xf32>
    %cst_37 = arith.constant dense<0.000000e+00> : vector<2x128xf32>
    %143 = tpu.matmul %140, %142, %cst_37 {dimension_numbers = #tpu.dot_dimension_numbers<[1], [0], [0], [1], [0, 0, 1, 1], [], []>} : vector<2x32xf32>, vector<32x128xf32>, vector<2x128xf32> -> vector<2x128xf32>
    %144 = arith.addf %141, %143 : vector<2x128xf32>
    %145 = arith.negf %144 : vector<2x128xf32>
    %146 = math.exp %145 : vector<2x128xf32>
    %cst_38 = arith.constant 1.000000e+00 : f32
    %147 = vector.broadcast %cst_38 : f32 to vector<2x128xf32>
    %148 = arith.addf %147, %146 : vector<2x128xf32>
    %149 = arith.divf %147, %148 : vector<2x128xf32>
    %150 = math.tanh %144 : vector<2x128xf32>
    %151 = vector.extract_strided_slice %149 {offsets = [0, 0], sizes = [2, 32], strides = [1, 1]} : vector<2x128xf32> to vector<2x32xf32>
    %152 = vector.extract_strided_slice %149 {offsets = [0, 32], sizes = [2, 32], strides = [1, 1]} : vector<2x128xf32> to vector<2x32xf32>
    %153 = vector.extract_strided_slice %150 {offsets = [0, 64], sizes = [2, 32], strides = [1, 1]} : vector<2x128xf32> to vector<2x32xf32>
    %154 = vector.extract_strided_slice %149 {offsets = [0, 96], sizes = [2, 32], strides = [1, 1]} : vector<2x128xf32> to vector<2x32xf32>
    %155 = arith.mulf %152, %138 : vector<2x32xf32>
    %156 = arith.mulf %151, %153 : vector<2x32xf32>
    %157 = arith.addf %155, %156 : vector<2x32xf32>
    %158 = math.tanh %157 : vector<2x32xf32>
    %159 = arith.mulf %154, %158 : vector<2x32xf32>
    %160 = tpu.concatenate %26, %45, %64, %83, %102, %121, %140, %159 in 0 : vector<2x32xf32>, vector<2x32xf32>, vector<2x32xf32>, vector<2x32xf32>, vector<2x32xf32>, vector<2x32xf32>, vector<2x32xf32>, vector<2x32xf32> -> vector<16x32xf32>
    %c0_39 = arith.constant 0 : index
    %c0_40 = arith.constant 0 : index
    %161 = vector.load %arg5[%c0_39, %c0_40] : memref<32x128xf32, #tpu.memory_space<vmem>>, vector<32x128xf32>
    %cst_41 = arith.constant dense<0.000000e+00> : vector<16x128xf32>
    %162 = tpu.matmul %160, %161, %cst_41 {dimension_numbers = #tpu.dot_dimension_numbers<[1], [0], [0], [1], [0, 0, 1, 1], [], []>} : vector<16x32xf32>, vector<32x128xf32>, vector<16x128xf32> -> vector<16x128xf32>
    %c0_42 = arith.constant 0 : index
    %c0_43 = arith.constant 0 : index
    %163 = vector.load %arg7[%c0_42, %c0_43] : memref<1x128xf32, #tpu.memory_space<vmem>>, vector<1x128xf32>
    %164 = vector.broadcast %163 : vector<1x128xf32> to vector<16x128xf32>
    %165 = arith.addf %162, %164 : vector<16x128xf32>
    %cst_44 = arith.constant 0.000000e+00 : f32
    %166 = vector.broadcast %cst_44 : f32 to vector<2x32xf32>
    %cst_45 = arith.constant 0.000000e+00 : f32
    %167 = vector.broadcast %cst_45 : f32 to vector<2x32xf32>
    %168 = vector.extract_strided_slice %165 {offsets = [0, 0], sizes = [2, 128], strides = [1, 1]} : vector<16x128xf32> to vector<2x128xf32>
    %c0_46 = arith.constant 0 : index
    %c0_47 = arith.constant 0 : index
    %169 = vector.load %arg6[%c0_46, %c0_47] : memref<32x128xf32, #tpu.memory_space<vmem>>, vector<32x128xf32>
    %cst_48 = arith.constant dense<0.000000e+00> : vector<2x128xf32>
    %170 = tpu.matmul %166, %169, %cst_48 {dimension_numbers = #tpu.dot_dimension_numbers<[1], [0], [0], [1], [0, 0, 1, 1], [], []>} : vector<2x32xf32>, vector<32x128xf32>, vector<2x128xf32> -> vector<2x128xf32>
    %171 = arith.addf %168, %170 : vector<2x128xf32>
    %172 = arith.negf %171 : vector<2x128xf32>
    %173 = math.exp %172 : vector<2x128xf32>
    %cst_49 = arith.constant 1.000000e+00 : f32
    %174 = vector.broadcast %cst_49 : f32 to vector<2x128xf32>
    %175 = arith.addf %174, %173 : vector<2x128xf32>
    %176 = arith.divf %174, %175 : vector<2x128xf32>
    %177 = math.tanh %171 : vector<2x128xf32>
    %178 = vector.extract_strided_slice %176 {offsets = [0, 0], sizes = [2, 32], strides = [1, 1]} : vector<2x128xf32> to vector<2x32xf32>
    %179 = vector.extract_strided_slice %176 {offsets = [0, 32], sizes = [2, 32], strides = [1, 1]} : vector<2x128xf32> to vector<2x32xf32>
    %180 = vector.extract_strided_slice %177 {offsets = [0, 64], sizes = [2, 32], strides = [1, 1]} : vector<2x128xf32> to vector<2x32xf32>
    %181 = vector.extract_strided_slice %176 {offsets = [0, 96], sizes = [2, 32], strides = [1, 1]} : vector<2x128xf32> to vector<2x32xf32>
    %182 = arith.mulf %179, %167 : vector<2x32xf32>
    %183 = arith.mulf %178, %180 : vector<2x32xf32>
    %184 = arith.addf %182, %183 : vector<2x32xf32>
    %185 = math.tanh %184 : vector<2x32xf32>
    %186 = arith.mulf %181, %185 : vector<2x32xf32>
    %187 = vector.extract_strided_slice %165 {offsets = [2, 0], sizes = [2, 128], strides = [1, 1]} : vector<16x128xf32> to vector<2x128xf32>
    %c0_50 = arith.constant 0 : index
    %c0_51 = arith.constant 0 : index
    %188 = vector.load %arg6[%c0_50, %c0_51] : memref<32x128xf32, #tpu.memory_space<vmem>>, vector<32x128xf32>
    %cst_52 = arith.constant dense<0.000000e+00> : vector<2x128xf32>
    %189 = tpu.matmul %186, %188, %cst_52 {dimension_numbers = #tpu.dot_dimension_numbers<[1], [0], [0], [1], [0, 0, 1, 1], [], []>} : vector<2x32xf32>, vector<32x128xf32>, vector<2x128xf32> -> vector<2x128xf32>
    %190 = arith.addf %187, %189 : vector<2x128xf32>
    %191 = arith.negf %190 : vector<2x128xf32>
    %192 = math.exp %191 : vector<2x128xf32>
    %cst_53 = arith.constant 1.000000e+00 : f32
    %193 = vector.broadcast %cst_53 : f32 to vector<2x128xf32>
    %194 = arith.addf %193, %192 : vector<2x128xf32>
    %195 = arith.divf %193, %194 : vector<2x128xf32>
    %196 = math.tanh %190 : vector<2x128xf32>
    %197 = vector.extract_strided_slice %195 {offsets = [0, 0], sizes = [2, 32], strides = [1, 1]} : vector<2x128xf32> to vector<2x32xf32>
    %198 = vector.extract_strided_slice %195 {offsets = [0, 32], sizes = [2, 32], strides = [1, 1]} : vector<2x128xf32> to vector<2x32xf32>
    %199 = vector.extract_strided_slice %196 {offsets = [0, 64], sizes = [2, 32], strides = [1, 1]} : vector<2x128xf32> to vector<2x32xf32>
    %200 = vector.extract_strided_slice %195 {offsets = [0, 96], sizes = [2, 32], strides = [1, 1]} : vector<2x128xf32> to vector<2x32xf32>
    %201 = arith.mulf %198, %184 : vector<2x32xf32>
    %202 = arith.mulf %197, %199 : vector<2x32xf32>
    %203 = arith.addf %201, %202 : vector<2x32xf32>
    %204 = math.tanh %203 : vector<2x32xf32>
    %205 = arith.mulf %200, %204 : vector<2x32xf32>
    %206 = vector.extract_strided_slice %165 {offsets = [4, 0], sizes = [2, 128], strides = [1, 1]} : vector<16x128xf32> to vector<2x128xf32>
    %c0_54 = arith.constant 0 : index
    %c0_55 = arith.constant 0 : index
    %207 = vector.load %arg6[%c0_54, %c0_55] : memref<32x128xf32, #tpu.memory_space<vmem>>, vector<32x128xf32>
    %cst_56 = arith.constant dense<0.000000e+00> : vector<2x128xf32>
    %208 = tpu.matmul %205, %207, %cst_56 {dimension_numbers = #tpu.dot_dimension_numbers<[1], [0], [0], [1], [0, 0, 1, 1], [], []>} : vector<2x32xf32>, vector<32x128xf32>, vector<2x128xf32> -> vector<2x128xf32>
    %209 = arith.addf %206, %208 : vector<2x128xf32>
    %210 = arith.negf %209 : vector<2x128xf32>
    %211 = math.exp %210 : vector<2x128xf32>
    %cst_57 = arith.constant 1.000000e+00 : f32
    %212 = vector.broadcast %cst_57 : f32 to vector<2x128xf32>
    %213 = arith.addf %212, %211 : vector<2x128xf32>
    %214 = arith.divf %212, %213 : vector<2x128xf32>
    %215 = math.tanh %209 : vector<2x128xf32>
    %216 = vector.extract_strided_slice %214 {offsets = [0, 0], sizes = [2, 32], strides = [1, 1]} : vector<2x128xf32> to vector<2x32xf32>
    %217 = vector.extract_strided_slice %214 {offsets = [0, 32], sizes = [2, 32], strides = [1, 1]} : vector<2x128xf32> to vector<2x32xf32>
    %218 = vector.extract_strided_slice %215 {offsets = [0, 64], sizes = [2, 32], strides = [1, 1]} : vector<2x128xf32> to vector<2x32xf32>
    %219 = vector.extract_strided_slice %214 {offsets = [0, 96], sizes = [2, 32], strides = [1, 1]} : vector<2x128xf32> to vector<2x32xf32>
    %220 = arith.mulf %217, %203 : vector<2x32xf32>
    %221 = arith.mulf %216, %218 : vector<2x32xf32>
    %222 = arith.addf %220, %221 : vector<2x32xf32>
    %223 = math.tanh %222 : vector<2x32xf32>
    %224 = arith.mulf %219, %223 : vector<2x32xf32>
    %225 = vector.extract_strided_slice %165 {offsets = [6, 0], sizes = [2, 128], strides = [1, 1]} : vector<16x128xf32> to vector<2x128xf32>
    %c0_58 = arith.constant 0 : index
    %c0_59 = arith.constant 0 : index
    %226 = vector.load %arg6[%c0_58, %c0_59] : memref<32x128xf32, #tpu.memory_space<vmem>>, vector<32x128xf32>
    %cst_60 = arith.constant dense<0.000000e+00> : vector<2x128xf32>
    %227 = tpu.matmul %224, %226, %cst_60 {dimension_numbers = #tpu.dot_dimension_numbers<[1], [0], [0], [1], [0, 0, 1, 1], [], []>} : vector<2x32xf32>, vector<32x128xf32>, vector<2x128xf32> -> vector<2x128xf32>
    %228 = arith.addf %225, %227 : vector<2x128xf32>
    %229 = arith.negf %228 : vector<2x128xf32>
    %230 = math.exp %229 : vector<2x128xf32>
    %cst_61 = arith.constant 1.000000e+00 : f32
    %231 = vector.broadcast %cst_61 : f32 to vector<2x128xf32>
    %232 = arith.addf %231, %230 : vector<2x128xf32>
    %233 = arith.divf %231, %232 : vector<2x128xf32>
    %234 = math.tanh %228 : vector<2x128xf32>
    %235 = vector.extract_strided_slice %233 {offsets = [0, 0], sizes = [2, 32], strides = [1, 1]} : vector<2x128xf32> to vector<2x32xf32>
    %236 = vector.extract_strided_slice %233 {offsets = [0, 32], sizes = [2, 32], strides = [1, 1]} : vector<2x128xf32> to vector<2x32xf32>
    %237 = vector.extract_strided_slice %234 {offsets = [0, 64], sizes = [2, 32], strides = [1, 1]} : vector<2x128xf32> to vector<2x32xf32>
    %238 = vector.extract_strided_slice %233 {offsets = [0, 96], sizes = [2, 32], strides = [1, 1]} : vector<2x128xf32> to vector<2x32xf32>
    %239 = arith.mulf %236, %222 : vector<2x32xf32>
    %240 = arith.mulf %235, %237 : vector<2x32xf32>
    %241 = arith.addf %239, %240 : vector<2x32xf32>
    %242 = math.tanh %241 : vector<2x32xf32>
    %243 = arith.mulf %238, %242 : vector<2x32xf32>
    %244 = vector.extract_strided_slice %165 {offsets = [8, 0], sizes = [2, 128], strides = [1, 1]} : vector<16x128xf32> to vector<2x128xf32>
    %c0_62 = arith.constant 0 : index
    %c0_63 = arith.constant 0 : index
    %245 = vector.load %arg6[%c0_62, %c0_63] : memref<32x128xf32, #tpu.memory_space<vmem>>, vector<32x128xf32>
    %cst_64 = arith.constant dense<0.000000e+00> : vector<2x128xf32>
    %246 = tpu.matmul %243, %245, %cst_64 {dimension_numbers = #tpu.dot_dimension_numbers<[1], [0], [0], [1], [0, 0, 1, 1], [], []>} : vector<2x32xf32>, vector<32x128xf32>, vector<2x128xf32> -> vector<2x128xf32>
    %247 = arith.addf %244, %246 : vector<2x128xf32>
    %248 = arith.negf %247 : vector<2x128xf32>
    %249 = math.exp %248 : vector<2x128xf32>
    %cst_65 = arith.constant 1.000000e+00 : f32
    %250 = vector.broadcast %cst_65 : f32 to vector<2x128xf32>
    %251 = arith.addf %250, %249 : vector<2x128xf32>
    %252 = arith.divf %250, %251 : vector<2x128xf32>
    %253 = math.tanh %247 : vector<2x128xf32>
    %254 = vector.extract_strided_slice %252 {offsets = [0, 0], sizes = [2, 32], strides = [1, 1]} : vector<2x128xf32> to vector<2x32xf32>
    %255 = vector.extract_strided_slice %252 {offsets = [0, 32], sizes = [2, 32], strides = [1, 1]} : vector<2x128xf32> to vector<2x32xf32>
    %256 = vector.extract_strided_slice %253 {offsets = [0, 64], sizes = [2, 32], strides = [1, 1]} : vector<2x128xf32> to vector<2x32xf32>
    %257 = vector.extract_strided_slice %252 {offsets = [0, 96], sizes = [2, 32], strides = [1, 1]} : vector<2x128xf32> to vector<2x32xf32>
    %258 = arith.mulf %255, %241 : vector<2x32xf32>
    %259 = arith.mulf %254, %256 : vector<2x32xf32>
    %260 = arith.addf %258, %259 : vector<2x32xf32>
    %261 = math.tanh %260 : vector<2x32xf32>
    %262 = arith.mulf %257, %261 : vector<2x32xf32>
    %263 = vector.extract_strided_slice %165 {offsets = [10, 0], sizes = [2, 128], strides = [1, 1]} : vector<16x128xf32> to vector<2x128xf32>
    %c0_66 = arith.constant 0 : index
    %c0_67 = arith.constant 0 : index
    %264 = vector.load %arg6[%c0_66, %c0_67] : memref<32x128xf32, #tpu.memory_space<vmem>>, vector<32x128xf32>
    %cst_68 = arith.constant dense<0.000000e+00> : vector<2x128xf32>
    %265 = tpu.matmul %262, %264, %cst_68 {dimension_numbers = #tpu.dot_dimension_numbers<[1], [0], [0], [1], [0, 0, 1, 1], [], []>} : vector<2x32xf32>, vector<32x128xf32>, vector<2x128xf32> -> vector<2x128xf32>
    %266 = arith.addf %263, %265 : vector<2x128xf32>
    %267 = arith.negf %266 : vector<2x128xf32>
    %268 = math.exp %267 : vector<2x128xf32>
    %cst_69 = arith.constant 1.000000e+00 : f32
    %269 = vector.broadcast %cst_69 : f32 to vector<2x128xf32>
    %270 = arith.addf %269, %268 : vector<2x128xf32>
    %271 = arith.divf %269, %270 : vector<2x128xf32>
    %272 = math.tanh %266 : vector<2x128xf32>
    %273 = vector.extract_strided_slice %271 {offsets = [0, 0], sizes = [2, 32], strides = [1, 1]} : vector<2x128xf32> to vector<2x32xf32>
    %274 = vector.extract_strided_slice %271 {offsets = [0, 32], sizes = [2, 32], strides = [1, 1]} : vector<2x128xf32> to vector<2x32xf32>
    %275 = vector.extract_strided_slice %272 {offsets = [0, 64], sizes = [2, 32], strides = [1, 1]} : vector<2x128xf32> to vector<2x32xf32>
    %276 = vector.extract_strided_slice %271 {offsets = [0, 96], sizes = [2, 32], strides = [1, 1]} : vector<2x128xf32> to vector<2x32xf32>
    %277 = arith.mulf %274, %260 : vector<2x32xf32>
    %278 = arith.mulf %273, %275 : vector<2x32xf32>
    %279 = arith.addf %277, %278 : vector<2x32xf32>
    %280 = math.tanh %279 : vector<2x32xf32>
    %281 = arith.mulf %276, %280 : vector<2x32xf32>
    %282 = vector.extract_strided_slice %165 {offsets = [12, 0], sizes = [2, 128], strides = [1, 1]} : vector<16x128xf32> to vector<2x128xf32>
    %c0_70 = arith.constant 0 : index
    %c0_71 = arith.constant 0 : index
    %283 = vector.load %arg6[%c0_70, %c0_71] : memref<32x128xf32, #tpu.memory_space<vmem>>, vector<32x128xf32>
    %cst_72 = arith.constant dense<0.000000e+00> : vector<2x128xf32>
    %284 = tpu.matmul %281, %283, %cst_72 {dimension_numbers = #tpu.dot_dimension_numbers<[1], [0], [0], [1], [0, 0, 1, 1], [], []>} : vector<2x32xf32>, vector<32x128xf32>, vector<2x128xf32> -> vector<2x128xf32>
    %285 = arith.addf %282, %284 : vector<2x128xf32>
    %286 = arith.negf %285 : vector<2x128xf32>
    %287 = math.exp %286 : vector<2x128xf32>
    %cst_73 = arith.constant 1.000000e+00 : f32
    %288 = vector.broadcast %cst_73 : f32 to vector<2x128xf32>
    %289 = arith.addf %288, %287 : vector<2x128xf32>
    %290 = arith.divf %288, %289 : vector<2x128xf32>
    %291 = math.tanh %285 : vector<2x128xf32>
    %292 = vector.extract_strided_slice %290 {offsets = [0, 0], sizes = [2, 32], strides = [1, 1]} : vector<2x128xf32> to vector<2x32xf32>
    %293 = vector.extract_strided_slice %290 {offsets = [0, 32], sizes = [2, 32], strides = [1, 1]} : vector<2x128xf32> to vector<2x32xf32>
    %294 = vector.extract_strided_slice %291 {offsets = [0, 64], sizes = [2, 32], strides = [1, 1]} : vector<2x128xf32> to vector<2x32xf32>
    %295 = vector.extract_strided_slice %290 {offsets = [0, 96], sizes = [2, 32], strides = [1, 1]} : vector<2x128xf32> to vector<2x32xf32>
    %296 = arith.mulf %293, %279 : vector<2x32xf32>
    %297 = arith.mulf %292, %294 : vector<2x32xf32>
    %298 = arith.addf %296, %297 : vector<2x32xf32>
    %299 = math.tanh %298 : vector<2x32xf32>
    %300 = arith.mulf %295, %299 : vector<2x32xf32>
    %301 = vector.extract_strided_slice %165 {offsets = [14, 0], sizes = [2, 128], strides = [1, 1]} : vector<16x128xf32> to vector<2x128xf32>
    %c0_74 = arith.constant 0 : index
    %c0_75 = arith.constant 0 : index
    %302 = vector.load %arg6[%c0_74, %c0_75] : memref<32x128xf32, #tpu.memory_space<vmem>>, vector<32x128xf32>
    %cst_76 = arith.constant dense<0.000000e+00> : vector<2x128xf32>
    %303 = tpu.matmul %300, %302, %cst_76 {dimension_numbers = #tpu.dot_dimension_numbers<[1], [0], [0], [1], [0, 0, 1, 1], [], []>} : vector<2x32xf32>, vector<32x128xf32>, vector<2x128xf32> -> vector<2x128xf32>
    %304 = arith.addf %301, %303 : vector<2x128xf32>
    %305 = arith.negf %304 : vector<2x128xf32>
    %306 = math.exp %305 : vector<2x128xf32>
    %cst_77 = arith.constant 1.000000e+00 : f32
    %307 = vector.broadcast %cst_77 : f32 to vector<2x128xf32>
    %308 = arith.addf %307, %306 : vector<2x128xf32>
    %309 = arith.divf %307, %308 : vector<2x128xf32>
    %310 = math.tanh %304 : vector<2x128xf32>
    %311 = vector.extract_strided_slice %309 {offsets = [0, 0], sizes = [2, 32], strides = [1, 1]} : vector<2x128xf32> to vector<2x32xf32>
    %312 = vector.extract_strided_slice %309 {offsets = [0, 32], sizes = [2, 32], strides = [1, 1]} : vector<2x128xf32> to vector<2x32xf32>
    %313 = vector.extract_strided_slice %310 {offsets = [0, 64], sizes = [2, 32], strides = [1, 1]} : vector<2x128xf32> to vector<2x32xf32>
    %314 = vector.extract_strided_slice %309 {offsets = [0, 96], sizes = [2, 32], strides = [1, 1]} : vector<2x128xf32> to vector<2x32xf32>
    %315 = arith.mulf %312, %298 : vector<2x32xf32>
    %316 = arith.mulf %311, %313 : vector<2x32xf32>
    %317 = arith.addf %315, %316 : vector<2x32xf32>
    %318 = math.tanh %317 : vector<2x32xf32>
    %319 = arith.mulf %314, %318 : vector<2x32xf32>
    %cst_78 = arith.constant 1.000010e+00 : f32
    %320 = math.sqrt %cst_78 : f32
    %cst_79 = arith.constant 1.000000e+00 : f32
    %321 = arith.divf %cst_79, %320 : f32
    %c0_80 = arith.constant 0 : index
    %c0_81 = arith.constant 0 : index
    %322 = vector.load %arg1[%c0_80, %c0_81] : memref<2x6xf32, #tpu.memory_space<vmem>>, vector<2x6xf32>
    %c0_82 = arith.constant 0 : index
    %c0_83 = arith.constant 0 : index
    %323 = vector.load %arg8[%c0_82, %c0_83] : memref<6x16xf32, #tpu.memory_space<vmem>>, vector<6x16xf32>
    %cst_84 = arith.constant dense<0.000000e+00> : vector<2x16xf32>
    %324 = tpu.matmul %322, %323, %cst_84 {dimension_numbers = #tpu.dot_dimension_numbers<[1], [0], [0], [1], [0, 0, 1, 1], [], []>} : vector<2x6xf32>, vector<6x16xf32>, vector<2x16xf32> -> vector<2x16xf32>
    %c0_85 = arith.constant 0 : index
    %c0_86 = arith.constant 0 : index
    %325 = vector.load %arg9[%c0_85, %c0_86] : memref<1x16xf32, #tpu.memory_space<vmem>>, vector<1x16xf32>
    %326 = vector.broadcast %325 : vector<1x16xf32> to vector<2x16xf32>
    %327 = arith.addf %324, %326 : vector<2x16xf32>
    %328 = vector.broadcast %321 : f32 to vector<2x32xf32>
    %329 = arith.mulf %319, %328 : vector<2x32xf32>
    %c0_87 = arith.constant 0 : index
    %c0_88 = arith.constant 0 : index
    %330 = vector.load %arg10[%c0_87, %c0_88] : memref<1x32xf32, #tpu.memory_space<vmem>>, vector<1x32xf32>
    %331 = vector.broadcast %330 : vector<1x32xf32> to vector<2x32xf32>
    %332 = arith.mulf %329, %331 : vector<2x32xf32>
    %c0_89 = arith.constant 0 : index
    %c0_90 = arith.constant 0 : index
    %333 = vector.load %arg11[%c0_89, %c0_90] : memref<1x32xf32, #tpu.memory_space<vmem>>, vector<1x32xf32>
    %334 = vector.broadcast %333 : vector<1x32xf32> to vector<2x32xf32>
    %335 = arith.addf %332, %334 : vector<2x32xf32>
    %cst_91 = arith.constant 0.000000e+00 : f32
    %336 = vector.broadcast %cst_91 : f32 to vector<2x32xf32>
    %337 = arith.maximumf %335, %336 : vector<2x32xf32>
    %338 = vector.broadcast %321 : f32 to vector<2x16xf32>
    %339 = arith.mulf %327, %338 : vector<2x16xf32>
    %c0_92 = arith.constant 0 : index
    %c0_93 = arith.constant 0 : index
    %340 = vector.load %arg12[%c0_92, %c0_93] : memref<1x16xf32, #tpu.memory_space<vmem>>, vector<1x16xf32>
    %341 = vector.broadcast %340 : vector<1x16xf32> to vector<2x16xf32>
    %342 = arith.mulf %339, %341 : vector<2x16xf32>
    %c0_94 = arith.constant 0 : index
    %c0_95 = arith.constant 0 : index
    %343 = vector.load %arg13[%c0_94, %c0_95] : memref<1x16xf32, #tpu.memory_space<vmem>>, vector<1x16xf32>
    %344 = vector.broadcast %343 : vector<1x16xf32> to vector<2x16xf32>
    %345 = arith.addf %342, %344 : vector<2x16xf32>
    %cst_96 = arith.constant 0.000000e+00 : f32
    %346 = vector.broadcast %cst_96 : f32 to vector<2x16xf32>
    %347 = arith.maximumf %345, %346 : vector<2x16xf32>
    %c0_97 = arith.constant 0 : index
    %c0_98 = arith.constant 0 : index
    %348 = vector.load %arg14[%c0_97, %c0_98] : memref<32x32xf32, #tpu.memory_space<vmem>>, vector<32x32xf32>
    %cst_99 = arith.constant dense<0.000000e+00> : vector<2x32xf32>
    %349 = tpu.matmul %337, %348, %cst_99 {dimension_numbers = #tpu.dot_dimension_numbers<[1], [0], [0], [1], [0, 0, 1, 1], [], []>} : vector<2x32xf32>, vector<32x32xf32>, vector<2x32xf32> -> vector<2x32xf32>
    %c0_100 = arith.constant 0 : index
    %c0_101 = arith.constant 0 : index
    %350 = vector.load %arg15[%c0_100, %c0_101] : memref<16x32xf32, #tpu.memory_space<vmem>>, vector<16x32xf32>
    %cst_102 = arith.constant dense<0.000000e+00> : vector<2x32xf32>
    %351 = tpu.matmul %347, %350, %cst_102 {dimension_numbers = #tpu.dot_dimension_numbers<[1], [0], [0], [1], [0, 0, 1, 1], [], []>} : vector<2x16xf32>, vector<16x32xf32>, vector<2x32xf32> -> vector<2x32xf32>
    %352 = arith.addf %349, %351 : vector<2x32xf32>
    %c0_103 = arith.constant 0 : index
    %c0_104 = arith.constant 0 : index
    %353 = vector.load %arg16[%c0_103, %c0_104] : memref<1x32xf32, #tpu.memory_space<vmem>>, vector<1x32xf32>
    %354 = vector.broadcast %353 : vector<1x32xf32> to vector<2x32xf32>
    %355 = arith.addf %352, %354 : vector<2x32xf32>
    %356 = vector.broadcast %321 : f32 to vector<2x32xf32>
    %357 = arith.mulf %355, %356 : vector<2x32xf32>
    %c0_105 = arith.constant 0 : index
    %c0_106 = arith.constant 0 : index
    %358 = vector.load %arg17[%c0_105, %c0_106] : memref<1x32xf32, #tpu.memory_space<vmem>>, vector<1x32xf32>
    %359 = vector.broadcast %358 : vector<1x32xf32> to vector<2x32xf32>
    %360 = arith.mulf %357, %359 : vector<2x32xf32>
    %c0_107 = arith.constant 0 : index
    %c0_108 = arith.constant 0 : index
    %361 = vector.load %arg18[%c0_107, %c0_108] : memref<1x32xf32, #tpu.memory_space<vmem>>, vector<1x32xf32>
    %362 = vector.broadcast %361 : vector<1x32xf32> to vector<2x32xf32>
    %363 = arith.addf %360, %362 : vector<2x32xf32>
    %cst_109 = arith.constant 0.000000e+00 : f32
    %364 = vector.broadcast %cst_109 : f32 to vector<2x32xf32>
    %365 = arith.maximumf %363, %364 : vector<2x32xf32>
    %c0_110 = arith.constant 0 : index
    %c0_111 = arith.constant 0 : index
    %366 = vector.load %arg19[%c0_110, %c0_111] : memref<32x5xf32, #tpu.memory_space<vmem>>, vector<32x5xf32>
    %cst_112 = arith.constant dense<0.000000e+00> : vector<2x5xf32>
    %367 = tpu.matmul %365, %366, %cst_112 {dimension_numbers = #tpu.dot_dimension_numbers<[1], [0], [0], [1], [0, 0, 1, 1], [], []>} : vector<2x32xf32>, vector<32x5xf32>, vector<2x5xf32> -> vector<2x5xf32>
    %c0_113 = arith.constant 0 : index
    %c0_114 = arith.constant 0 : index
    %368 = vector.load %arg20[%c0_113, %c0_114] : memref<1x5xf32, #tpu.memory_space<vmem>>, vector<1x5xf32>
    %369 = vector.broadcast %368 : vector<1x5xf32> to vector<2x5xf32>
    %370 = arith.addf %367, %369 : vector<2x5xf32>
    %c0_115 = arith.constant 0 : index
    %c0_116 = arith.constant 0 : index
    %371 = vector.load %arg21[%c0_115, %c0_116] : memref<2x5xf32, #tpu.memory_space<vmem>>, vector<2x5xf32>
    tpu.vector_store %arg21[%c0_115, %c0_116], %370 {strides = array<i32>} : memref<2x5xf32, #tpu.memory_space<vmem>>, vector<2x5xf32>,
    return
  }
}

</mosaic_0001>

<bundles_post_ra>
// kernel: tpu_custom_call.1
= control target key start
LH: loop header
LB: loop body
LE: loop exit
PB: predicated region body
PF: predicated region fallthrough
CT: control target
= control target key end

     0   :  { %s4076_s0 = inlined_call_operand.vmem [shape: f32[16,4], index: 0, kind: input, shape index: {}]   ;;  %s4077_s1 = inlined_call_operand.hbm [shape: f32[2,6], index: 1, kind: input, shape index: {}]   ;;  %s4078_s2 = inlined_call_operand.hbm [shape: f32[4,128], index: 2, kind: input, shape index: {}]   ;;  %s4079_s3 = inlined_call_operand.vmem [shape: f32[32,128], index: 3, kind: input, shape index: {}]   ;;  %s4080_s4 = inlined_call_operand.hbm [shape: f32[1,128], index: 4, kind: input, shape index: {}]   ;;  %s4081_s5 = inlined_call_operand.vmem [shape: f32[32,128], index: 5, kind: input, shape index: {}]   ;;  %s4082_s6 = inlined_call_operand.hbm [shape: f32[32,128], index: 6, kind: input, shape index: {}]   ;;  %s4083_s7 = inlined_call_operand.hbm [shape: f32[1,128], index: 7, kind: input, shape index: {}]   ;;  %s4084_s8 = inlined_call_operand.hbm [shape: f32[6,16], index: 8, kind: input, shape index: {}]   ;;  %s4085_s9 = inlined_call_operand.hbm [shape: f32[1,16], index: 9, kind: input, shape index: {}]   ;;  %s4086_s10 = inlined_call_operand.hbm [shape: f32[1,32], index: 10, kind: input, shape index: {}]   ;;  %s4087_s11 = inlined_call_operand.hbm [shape: f32[1,32], index: 11, kind: input, shape index: {}]   ;;  %s4088_s12 = inlined_call_operand.hbm [shape: f32[1,16], index: 12, kind: input, shape index: {}]   ;;  %s4089_s13 = inlined_call_operand.hbm [shape: f32[1,16], index: 13, kind: input, shape index: {}]   ;;  %s4090_s14 = inlined_call_operand.vmem [shape: f32[32,32], index: 14, kind: input, shape index: {}]   ;;  %s4091_s15 = inlined_call_operand.vmem [shape: f32[16,32], index: 15, kind: input, shape index: {}]   ;;  %s4092_s16 = inlined_call_operand.hbm [shape: f32[1,32], index: 16, kind: input, shape index: {}]   ;;  %s4093_s17 = inlined_call_operand.vmem [shape: f32[1,32], index: 17, kind: input, shape index: {}]   ;;  %s4094_s18 = inlined_call_operand.vmem [shape: f32[1,32], index: 18, kind: input, shape index: {}]   ;;  %s4095_s19 = inlined_call_operand.vmem [shape: f32[32,5], index: 19, kind: input, shape index: {}]   ;;  %s4096_s20 = inlined_call_operand.vmem [shape: f32[1,5], index: 20, kind: input, shape index: {}]   ;;  %s4097_s21 = inlined_call_operand.hbm [shape: f32[2,5], index: 21, kind: output, shape index: {}]  }
   0x1   :  { %4105 = sst [smem:[#allocation31_spill]] %s4076_s0 }
   0x2   :  { %4106 = sst [smem:[#allocation32_spill]] %s4077_s1 }
   0x3   :  { %4107 = sst [smem:[#allocation33_spill]] %s4078_s2 }
   0x4   :  { %4108 = sst [smem:[#allocation34_spill]] %s4079_s3 }
   0x5   :  { %4109 = sst [smem:[#allocation35_spill]] %s4080_s4 }
   0x6   :  { %4110 = sst [smem:[#allocation36_spill]] %s4081_s5 }
   0x7   :  { %4111 = sst [smem:[#allocation37_spill]] %s4097_s21 }
   0x8   :  { %26 = vsyncpa [#allocation3], 0 }
   0x9   :  { %27 = vsyncpa [#allocation6], 0 }
   0xa   :  { %28 = vsyncpa [#allocation9], 0 }
   0xb   :  { %29 = vsyncpa [#allocation12], 0 }
   0xc   :  { %30 = vsyncpa [#allocation15], 0 }
   0xd   :  { %31 = vsyncpa [#allocation18], 0 }
   0xe   :  { %32 = vsyncpa [#allocation21], 0 }
   0xf   :  { %33 = vsyncpa [#allocation4], 0  ;;  %s3466_s2 = smov [#allocation5]   ;;  %s3467_s26 = smov [#allocation8]  }
  0x10   :  { %s52_s25 = sshll.u32 %s3466_s2, 4  ;;  %s75_s27 = sshll.u32 %s3467_s26, 4  ;;  %s53_s25 = int_to_ptr.vmem [resolvable:$true] %s52_s25  ;;  %s3597_s27 = int_to_ptr.vmem [resolvable:$true] %s75_s27 }
  0x11   :  { %s4112_s29 = sld [smem:[#allocation33_spill]] }
  0x17   :  { %s3164_s0 = scalar_lea.hbm %s4112_s29, 64 }
  0x18   :  { %p3165_p0 = scmp.ne.s32.totalorder %s4112_s29, %s3164_s0  ;;  %p3168_p1 = scmp.lt.u32.totalorder %s3164_s0, %s4112_s29 }
  0x1a   :  { %p3170_p2 = pnand %p3168_p1, %p3165_p0 }
  0x1c   :  { %3173 = shalt.err (!%p3170_p2)
}
  0x1d   :  { %s3174_s23 = scalar_lea.vmem %s53_s25, 64  ;;  %p3179_p4 = scmp.lt.s32.totalorder %s53_s25, %s53_s25 }
  0x1e   :  { %p3175_p3 = scmp.ne.s32.totalorder %s53_s25, %s3174_s23  ;;  %p3180_p5 = scmp.lt.s32.totalorder %s3174_s23, %s3174_s23 }
  0x20   :  { %p3181_p6 = por %p3180_p5, %p3179_p4 }
  0x22   :  { %p3182_p7 = pnand %p3181_p6, %p3175_p3 }
  0x24   :  { %3185 = shalt.err (!%p3182_p7)
}
  0x25   :  { %55 = dma.hbm_to_vmem [thread:$0]  %s4112_s29, 64, %s53_s25, [#allocation6]  }
  0x26   :  { %s3186_s3 = scalar_lea.hbm %s4082_s6, 512 }
  0x27   :  { %p3187_p8 = scmp.ne.s32.totalorder %s4082_s6, %s3186_s3  ;;  %p3190_p9 = scmp.lt.u32.totalorder %s3186_s3, %s4082_s6 }
  0x29   :  { %p3192_p10 = pnand %p3190_p9, %p3187_p8 }
  0x2b   :  { %3195 = shalt.err (!%p3192_p10)
}
  0x2c   :  { %s3196_s5 = scalar_lea.vmem %s3597_s27, 512  ;;  %p3201_p12 = scmp.lt.s32.totalorder %s3597_s27, %s3597_s27 }
  0x2d   :  { %p3197_p11 = scmp.ne.s32.totalorder %s3597_s27, %s3196_s5  ;;  %p3202_p13 = scmp.lt.s32.totalorder %s3196_s5, %s3196_s5 }
  0x2f   :  { %p3203_p0 = por %p3202_p13, %p3201_p12 }
  0x31   :  { %p3204_p1 = pnand %p3203_p0, %p3197_p11 }
  0x33   :  { %3207 = shalt.err (!%p3204_p1)
}
  0x34   :  { %s3468_s25 = smov 128   ;;  %s3469_s29 = smov 8  }
  0x35   :  { %81 = dma.hbm_to_vmem [thread:$0]  %s4082_s6, 512, %s3597_s27, [#allocation9], %s3468_s25, %s3468_s25, %s3469_s29  }
  0x36   :  { %s3470_s1 = smov [#allocation11]   ;;  %s3471_s2 = smov [#allocation14]  }
  0x37   :  { %s98_s24 = sshll.u32 %s3470_s1, 4  ;;  %s118_s26 = sshll.u32 %s3471_s2, 4  ;;  %s99_s24 = int_to_ptr.vmem [resolvable:$true] %s98_s24  ;;  %s119_s26 = int_to_ptr.vmem [resolvable:$true] %s118_s26 }
  0x38   :  { %s3208_s4 = scalar_lea.hbm %s4084_s8, 128 }
  0x39   :  { %p3209_p2 = scmp.ne.s32.totalorder %s4084_s8, %s3208_s4  ;;  %p3212_p3 = scmp.lt.u32.totalorder %s3208_s4, %s4084_s8 }
  0x3b   :  { %p3214_p4 = pnand %p3212_p3, %p3209_p2 }
  0x3d   :  { %3217 = shalt.err (!%p3214_p4)
}
  0x3e   :  { %s3218_s6 = scalar_lea.vmem %s99_s24, 128  ;;  %p3223_p6 = scmp.lt.s32.totalorder %s99_s24, %s99_s24 }
  0x3f   :  { %p3219_p5 = scmp.ne.s32.totalorder %s99_s24, %s3218_s6  ;;  %p3224_p7 = scmp.lt.s32.totalorder %s3218_s6, %s3218_s6 }
  0x41   :  { %p3225_p8 = por %p3224_p7, %p3223_p6 }
  0x43   :  { %p3226_p9 = pnand %p3225_p8, %p3219_p5 }
  0x45   :  { %3229 = shalt.err (!%p3226_p9)
}
  0x46   :  { %101 = dma.hbm_to_vmem [thread:$0]  %s4084_s8, 128, %s99_s24, [#allocation12]  }
  0x47   :  { %s3230_s23 = scalar_lea.hbm %s4086_s10, 16 }
  0x48   :  { %p3231_p10 = scmp.ne.s32.totalorder %s4086_s10, %s3230_s23  ;;  %p3234_p11 = scmp.lt.u32.totalorder %s3230_s23, %s4086_s10 }
  0x4a   :  { %p3236_p12 = pnand %p3234_p11, %p3231_p10 }
  0x4c   :  { %3239 = shalt.err (!%p3236_p12)
}
  0x4d   :  { %s3240_s28 = scalar_lea.vmem %s119_s26, 16  ;;  %s3244_s4 = scalar_lea.vmem %s119_s26, 32 }
  0x4e   :  { %p3241_p13 = scmp.ne.s32.totalorder %s119_s26, %s3240_s28  ;;  %p3245_p0 = scmp.lt.s32.totalorder %s119_s26, %s119_s26 }
  0x4f   :  { %p3246_p1 = scmp.lt.s32.totalorder %s3244_s4, %s3240_s28 }
  0x51   :  { %p3247_p2 = por %p3246_p1, %p3245_p0 }
  0x53   :  { %p3248_p3 = pnand %p3247_p2, %p3241_p13 }
  0x55   :  { %3251 = shalt.err (!%p3248_p3)
}
  0x56   :  { %121 = dma.hbm_to_vmem [thread:$0]  %s4086_s10, 16, %s119_s26, [#allocation15]  }
  0x57   :  { %s3472_s0 = smov [#allocation17]   ;;  %s3473_s5 = smov [#allocation2]  }
  0x58   :  { %s138_s30 = sshll.u32 %s3472_s0, 4  ;;  %s42_s6 = sshll.u32 %s3473_s5, 4  ;;  %s139_s30 = int_to_ptr.vmem [resolvable:$true] %s138_s30  ;;  %s43_s6 = int_to_ptr.vmem [resolvable:$true] %s42_s6 }
  0x59   :  { %s3252_s29 = scalar_lea.hbm %s4088_s12, 16 }
  0x5a   :  { %p3253_p4 = scmp.ne.s32.totalorder %s4088_s12, %s3252_s29  ;;  %p3256_p5 = scmp.lt.u32.totalorder %s3252_s29, %s4088_s12 }
  0x5c   :  { %p3258_p6 = pnand %p3256_p5, %p3253_p4 }
  0x5e   :  { %3261 = shalt.err (!%p3258_p6)
}
  0x5f   :  { %s3262_s10 = scalar_lea.vmem %s139_s30, 16  ;;  %s3266_s26 = scalar_lea.vmem %s139_s30, 32 }
  0x60   :  { %p3263_p7 = scmp.ne.s32.totalorder %s139_s30, %s3262_s10  ;;  %p3267_p8 = scmp.lt.s32.totalorder %s139_s30, %s139_s30 }
  0x61   :  { %p3268_p9 = scmp.lt.s32.totalorder %s3266_s26, %s3262_s10 }
  0x63   :  { %p3269_p10 = por %p3268_p9, %p3267_p8 }
  0x65   :  { %p3270_p11 = pnand %p3269_p10, %p3263_p7 }
  0x67   :  { %3273 = shalt.err (!%p3270_p11)
}
  0x68   :  { %141 = dma.hbm_to_vmem [thread:$0]  %s4088_s12, 16, %s139_s30, [#allocation18]  }
  0x69   :  { %s4113_s8 = sld [smem:[#allocation32_spill]] }
  0x6f   :  { %s3274_s24 = scalar_lea.hbm %s4113_s8, 32 }
  0x70   :  { %p3275_p12 = scmp.ne.s32.totalorder %s4113_s8, %s3274_s24  ;;  %p3278_p13 = scmp.lt.u32.totalorder %s3274_s24, %s4113_s8 }
  0x72   :  { %p3280_p0 = pnand %p3278_p13, %p3275_p12 }
  0x74   :  { %3283 = shalt.err (!%p3280_p0)
}
  0x75   :  { %s3284_s29 = scalar_lea.vmem %s43_s6, 32  ;;  %p3289_p2 = scmp.lt.s32.totalorder %s43_s6, %s43_s6 }
  0x76   :  { %p3285_p1 = scmp.ne.s32.totalorder %s43_s6, %s3284_s29  ;;  %p3290_p3 = scmp.lt.s32.totalorder %s3284_s29, %s3284_s29 }
  0x78   :  { %p3291_p4 = por %p3290_p3, %p3289_p2 }
  0x7a   :  { %p3292_p5 = pnand %p3291_p4, %p3285_p1 }
  0x7c   :  { %3295 = shalt.err (!%p3292_p5)
}
  0x7d   :  { %45 = dma.hbm_to_vmem [thread:$0]  %s4113_s8, 32, %s43_s6, [#allocation3]  }
  0x7e   :  { %s3474_s22 = smov [#allocation7]   ;;  %s3475_s1 = smov [#allocation10]  }
  0x7f   :  { %s64_s23 = sshll.u32 %s3474_s22, 4  ;;  %s88_s21 = sshll.u32 %s3475_s1, 4  ;;  %s65_s23 = int_to_ptr.vmem [resolvable:$true] %s64_s23  ;;  %s89_s21 = int_to_ptr.vmem [resolvable:$true] %s88_s21 }
  0x80   :  { %s4114_s2 = sld [smem:[#allocation35_spill]] }
  0x86   :  { %s3296_s3 = scalar_lea.hbm %s4114_s2, 16 }
  0x87   :  { %p3297_p6 = scmp.ne.s32.totalorder %s4114_s2, %s3296_s3  ;;  %p3300_p7 = scmp.lt.u32.totalorder %s3296_s3, %s4114_s2 }
  0x89   :  { %p3302_p8 = pnand %p3300_p7, %p3297_p6 }
  0x8b   :  { %3305 = shalt.err (!%p3302_p8)
}
  0x8c   :  { %s3306_s6 = scalar_lea.vmem %s65_s23, 16  ;;  %s3310_s8 = scalar_lea.vmem %s65_s23, 32 }
  0x8d   :  { %p3307_p9 = scmp.ne.s32.totalorder %s65_s23, %s3306_s6  ;;  %p3311_p10 = scmp.lt.s32.totalorder %s65_s23, %s65_s23 }
  0x8e   :  { %p3312_p11 = scmp.lt.s32.totalorder %s3310_s8, %s3306_s6 }
  0x90   :  { %p3313_p12 = por %p3312_p11, %p3311_p10 }
  0x92   :  { %p3314_p13 = pnand %p3313_p12, %p3307_p9 }
  0x94   :  { %3317 = shalt.err (!%p3314_p13)
}
  0x95   :  { %67 = dma.hbm_to_vmem [thread:$0]  %s4114_s2, 16, %s65_s23, [#allocation6]  }
  0x96   :  { %s3318_s12 = scalar_lea.hbm %s4083_s7, 16 }
  0x97   :  { %p3319_p0 = scmp.ne.s32.totalorder %s4083_s7, %s3318_s12  ;;  %p3322_p1 = scmp.lt.u32.totalorder %s3318_s12, %s4083_s7 }
  0x99   :  { %p3324_p2 = pnand %p3322_p1, %p3319_p0 }
  0x9b   :  { %3327 = shalt.err (!%p3324_p2)
}
  0x9c   :  { %s3328_s26 = scalar_lea.vmem %s89_s21, 16  ;;  %s3332_s3 = scalar_lea.vmem %s89_s21, 32 }
  0x9d   :  { %p3329_p3 = scmp.ne.s32.totalorder %s89_s21, %s3328_s26  ;;  %p3333_p4 = scmp.lt.s32.totalorder %s89_s21, %s89_s21 }
  0x9e   :  { %p3334_p5 = scmp.lt.s32.totalorder %s3332_s3, %s3328_s26 }
  0xa0   :  { %p3335_p6 = por %p3334_p5, %p3333_p4 }
  0xa2   :  { %p3336_p7 = pnand %p3335_p6, %p3329_p3 }
  0xa4   :  { %3339 = shalt.err (!%p3336_p7)
}
  0xa5   :  { %91 = dma.hbm_to_vmem [thread:$0]  %s4083_s7, 16, %s89_s21, [#allocation9]  }
  0xa6   :  { %s3476_s28 = smov [#allocation13]   ;;  %s3477_s24 = smov [#allocation16]  }
  0xa7   :  { %s108_s4 = sshll.u32 %s3476_s28, 4  ;;  %s128_s0 = sshll.u32 %s3477_s24, 4  ;;  %s109_s4 = int_to_ptr.vmem [resolvable:$true] %s108_s4  ;;  %s129_s0 = int_to_ptr.vmem [resolvable:$true] %s128_s0 }
  0xa8   :  { %s3340_s5 = scalar_lea.hbm %s4085_s9, 16 }
  0xa9   :  { %p3341_p8 = scmp.ne.s32.totalorder %s4085_s9, %s3340_s5  ;;  %p3344_p9 = scmp.lt.u32.totalorder %s3340_s5, %s4085_s9 }
  0xab   :  { %p3346_p10 = pnand %p3344_p9, %p3341_p8 }
  0xad   :  { %3349 = shalt.err (!%p3346_p10)
}
  0xae   :  { %s3350_s7 = scalar_lea.vmem %s109_s4, 16  ;;  %s3354_s21 = scalar_lea.vmem %s109_s4, 32 }
  0xaf   :  { %p3351_p11 = scmp.ne.s32.totalorder %s109_s4, %s3350_s7  ;;  %p3355_p12 = scmp.lt.s32.totalorder %s109_s4, %s109_s4 }
  0xb0   :  { %p3356_p13 = scmp.lt.s32.totalorder %s3354_s21, %s3350_s7 }
  0xb2   :  { %p3357_p0 = por %p3356_p13, %p3355_p12 }
  0xb4   :  { %p3358_p1 = pnand %p3357_p0, %p3351_p11 }
  0xb6   :  { %3361 = shalt.err (!%p3358_p1)
}
  0xb7   :  { %111 = dma.hbm_to_vmem [thread:$0]  %s4085_s9, 16, %s109_s4, [#allocation12]  }
  0xb8   :  { %s3362_s26 = scalar_lea.hbm %s4087_s11, 16 }
  0xb9   :  { %p3363_p2 = scmp.ne.s32.totalorder %s4087_s11, %s3362_s26  ;;  %p3366_p3 = scmp.lt.u32.totalorder %s3362_s26, %s4087_s11 }
  0xbb   :  { %p3368_p4 = pnand %p3366_p3, %p3363_p2 }
  0xbd   :  { %3371 = shalt.err (!%p3368_p4)
}
  0xbe   :  { %s3372_s24 = scalar_lea.vmem %s129_s0, 16  ;;  %s3376_s6 = scalar_lea.vmem %s129_s0, 32 }
  0xbf   :  { %p3373_p5 = scmp.ne.s32.totalorder %s129_s0, %s3372_s24  ;;  %p3377_p6 = scmp.lt.s32.totalorder %s129_s0, %s129_s0 }
  0xc0   :  { %p3378_p7 = scmp.lt.s32.totalorder %s3376_s6, %s3372_s24 }
  0xc2   :  { %p3379_p8 = por %p3378_p7, %p3377_p6 }
  0xc4   :  { %p3380_p9 = pnand %p3379_p8, %p3373_p5 }
  0xc6   :  { %3383 = shalt.err (!%p3380_p9)
}
  0xc7   :  { %131 = dma.hbm_to_vmem [thread:$0]  %s4087_s11, 16, %s129_s0, [#allocation15]  }
  0xc8   :  { %s3478_s8 = smov [#allocation19]   ;;  %s3479_s27 = smov [#allocation20]  }
  0xc9   :  { %s148_s5 = sshll.u32 %s3478_s8, 4  ;;  %s162_s25 = sshll.u32 %s3479_s27, 4  ;;  %s149_s5 = int_to_ptr.vmem [resolvable:$true] %s148_s5  ;;  %s163_s25 = int_to_ptr.vmem [resolvable:$true] %s162_s25 }
  0xca   :  { %s3384_s7 = scalar_lea.hbm %s4089_s13, 16 }
  0xcb   :  { %p3385_p10 = scmp.ne.s32.totalorder %s4089_s13, %s3384_s7  ;;  %p3388_p11 = scmp.lt.u32.totalorder %s3384_s7, %s4089_s13 }
  0xcd   :  { %p3390_p12 = pnand %p3388_p11, %p3385_p10 }
  0xcf   :  { %3393 = shalt.err (!%p3390_p12)
}
  0xd0   :  { %s3394_s11 = scalar_lea.vmem %s149_s5, 16  ;;  %s3398_s0 = scalar_lea.vmem %s149_s5, 32 }
  0xd1   :  { %p3395_p13 = scmp.ne.s32.totalorder %s149_s5, %s3394_s11  ;;  %p3399_p0 = scmp.lt.s32.totalorder %s149_s5, %s149_s5 }
  0xd2   :  { %p3400_p1 = scmp.lt.s32.totalorder %s3398_s0, %s3394_s11 }
  0xd4   :  { %p3401_p2 = por %p3400_p1, %p3399_p0 }
  0xd6   :  { %p3402_p3 = pnand %p3401_p2, %p3395_p13 }
  0xd8   :  { %3405 = shalt.err (!%p3402_p3)
}
  0xd9   :  { %151 = dma.hbm_to_vmem [thread:$0]  %s4089_s13, 16, %s149_s5, [#allocation18]  }
  0xda   :  { %s3406_s2 = scalar_lea.hbm %s4092_s16, 16 }
  0xdb   :  { %p3407_p4 = scmp.ne.s32.totalorder %s4092_s16, %s3406_s2  ;;  %p3410_p5 = scmp.lt.u32.totalorder %s3406_s2, %s4092_s16 }
  0xdd   :  { %p3412_p6 = pnand %p3410_p5, %p3407_p4 }
  0xdf   :  { %3415 = shalt.err (!%p3412_p6)
}
  0xe0   :  { %s3416_s4 = scalar_lea.vmem %s163_s25, 16  ;;  %s3420_s8 = scalar_lea.vmem %s163_s25, 32 }
  0xe1   :  { %p3417_p7 = scmp.ne.s32.totalorder %s163_s25, %s3416_s4  ;;  %p3421_p8 = scmp.lt.s32.totalorder %s163_s25, %s163_s25 }
  0xe2   :  { %p3422_p9 = scmp.lt.s32.totalorder %s3420_s8, %s3416_s4 }
  0xe4   :  { %p3423_p10 = por %p3422_p9, %p3421_p8 }
  0xe6   :  { %p3424_p11 = pnand %p3423_p10, %p3417_p7 }
  0xe8   :  { %3427 = shalt.err (!%p3424_p11)
}
  0xe9   :  { %165 = dma.hbm_to_vmem [thread:$0]  %s4092_s16, 16, %s163_s25, [#allocation21]  }
  0xea   :  { %3450 = dma.done.wait [#allocation3], 32  }
  0xeb   :  { %3451 = vsyncadd [#allocation3], 4294967264 }
  0xec   :  { %3452 = dma.done.wait [#allocation6], 80  }
  0xed   :  { %3453 = vsyncadd [#allocation6], 4294967216 }
  0xee   :  { %3454 = dma.done.wait [#allocation9], 528  }
  0xef   :  { %3455 = vsyncadd [#allocation9], 4294966768 }
  0xf0   :  { %3456 = dma.done.wait [#allocation12], 144  }
  0xf1   :  { %3457 = vsyncadd [#allocation12], 4294967152 }
  0xf2   :  { %3458 = dma.done.wait [#allocation15], 32  }
  0xf3   :  { %3459 = vsyncadd [#allocation15], 4294967264 }
  0xf4   :  { %3460 = dma.done.wait [#allocation18], 32  }
  0xf5   :  { %3461 = vsyncadd [#allocation18], 4294967264 }
  0xf6   :  { %3462 = dma.done.wait [#allocation21], 16  }
  0xf7   :  { %3463 = vsyncadd [#allocation21], 4294967280  ;;  %v3480_v0 = vmov 0.0|0.0   ;;  %vm3481_vm0 = vmmov 0   ;;  %v3482_v1 = vmov 0.0   ;;  %vm227_vm1 = vcmask 1043456  }
  0xf8   :  { %2896 = vmatprep.subr.bf16.mxu1 %v3480_v0  ;;  %2683 = vmatprep.mubr.msk.f32.mxu1 %vm3481_vm0, %v3482_v1  ;;  %vm220_vm2 = vcmask 31744   ;;  %s4115_s25 = sld [smem:[#allocation34_spill]]  ;;  %v212_v4 = vld [vmem:[#allocation5] sm:$0xf]  ;;  %s4116_s30 = sld [smem:[#allocation31_spill]]  ;;  %vm310_vm3 = vcmask 261120  }
  0xf9   :  { %2670 = vmatprep.subr.msk.mxu0 %vm227_vm1, %v212_v4  ;;  %v2515_v11 = vld [vmem:[#allocation7] ss:$0 sm:$0xff]  ;;  %s3483_s3 = smov 64   ;;  %s3484_s23 = smov 32   ;;  %vm1153_vm4 = vcmask 1041408   ;;  %vm1156_vm5 = vcmask 1045504  }
  0xfa   :  { %2671 = vmatpush3.msk.msra.mxu0 %vm227_vm1, %v212_v4  ;;  %s4117_s24 = sld [smem:[#allocation36_spill]]  ;;  %s3485_s16 = smov 96   ;;  %vm2109_vm6 = vcmask 48128   ;;  %vm2232_vm7 = vcmask 130048   ;;  %vm2492_vm8 = vcmask 33792  }
  0xfb   :  { %2902 = vmatprep.subr.bf16.mxu0 %v3480_v0  ;;  %s3486_s5 = smov [#allocation22]  }
  0xfe   :  { %v306_v2 = vld [vmem:[%s4115_s25] sm:$0xff]  ;;  %v307_v3 = vld [vmem:[%s4115_s25 + $0x8] sm:$0xff]  ;;  %v308_v8 = vld [vmem:[%s4115_s25 + $0x10] sm:$0xff] }
  0xff   :  { %v3757_v5 = vpack.c.bf16 %v307_v3, %v306_v2  ;;  %v210_v6 = vld [vmem:[%s4116_s30] sm:$0xff]  ;;  %v211_v7 = vld [vmem:[%s4116_s30 + $0x8] sm:$0xff]  ;;  %v309_v9 = vld [vmem:[%s4115_s25 + $0x18] sm:$0xff] }
 0x100   :  { %2672 = vmatprep.mubr.msk.f32.mxu0 %vm220_vm2, %v210_v6  ;;  %v3774_v10 = vpack.c.bf16 %v309_v9, %v308_v8 }
 0x101   :  { %2898 = vmatpush3.bf16.msra.mxu1 %v3757_v5  ;;  %2673 = vmatmul.mubr.msk.f32.vlgmr.msra.gmra.mrb[0].mxu0 %vm220_vm2, %v211_v7 }
 0x102   :  { %2899 = vmatprep.subr.bf16.mxu1 %v3480_v0  ;;  %2904 = vmatpush3.bf16.msra.mxu0 %v3757_v5 }
 0x103   :  { %2694 = vmatprep.mubr.msk.f32.mxu0 %vm3481_vm0, %v3482_v1  ;;  %2905 = vmatprep.subr.bf16.mxu0 %v3480_v0 }
 0x105   :  { %2901 = vmatpush3.bf16.msra.mxu1 %v3774_v10 }
 0x106   :  { %2908 = vmatprep.subr.bf16.mxu1 %v3480_v0  ;;  %2907 = vmatpush3.bf16.msra.mxu0 %v3774_v10 }
 0x107   :  { %2914 = vmatprep.subr.bf16.mxu0 %v3480_v0 }
 0x108   :  { %2684 = vmatmul.mubr.f32.vlgmr.msra.gmra.mrb[0].mxu1 %v3482_v1 }
 0x109   :  { %2910 = vmatpush3.bf16.msra.mxu1 %v3757_v5  ;;  %2705 = vmatprep.mubr.msk.f32.mxu1 %vm3481_vm0, %v3482_v1 }
 0x10a   :  { %2911 = vmatprep.subr.bf16.mxu1 %v3480_v0 }
 0x10d   :  { %2913 = vmatpush3.bf16.msra.mxu1 %v3774_v10 }
 0x10e   :  { %2920 = vmatprep.subr.bf16.mxu1 %v3480_v0 }
 0x1d4   :  { %v2674_v12 = vpop.f32.mrb[0].mxu0 }
 0x1d5   :  { %v3793_v13 = vadd.f32 %v2674_v12, %v2515_v11  ;;  %v297_v14 = vpop.f32.mrb[1].mxu0 }
 0x1d6   :  { %v3795_v15 = vadd.f32 %v2515_v11, %v297_v14 }
 0x1db   :  { %v380_v16 = vpop.f32.mrb[0].mxu1 }
 0x1dc   :  { %v384_v17 = vadd.f32 %v380_v16, %v3795_v15  ;;  %v2685_v18 = vpop.f32.mrb[1].mxu1 }
 0x1de   :  { %3036 = vtanh.f32 %v384_v17  ;;  %v2519_v20 = vmul.f32 -1.442695, %v384_v17 }
 0x1e0   :  { %3038 = vpow2.f32 %v2519_v20 }
 0x1e8   :  { %v3037_v19 = vpop.eup %3036 }
 0x1e9   :  { %394 = vrot.lane.b32.xlu0 %v3037_v19, %s3483_s3 }
 0x1ea   :  { %v3039_v21 = vpop.eup %3038 }
 0x1eb   :  { %v388_v22 = vadd.f32 1.0, %v3039_v21 }
 0x1ed   :  { %3040 = vrcp.f32 %v388_v22 }
 0x1f7   :  { %v3041_v23 = vpop.eup %3040 }
 0x1f8   :  { %v392_v26 = vmul.f32 0.0, %v3041_v23 }
 0x25b   :  { %v395_v24 = vpop.permute.xlu0 %394 }
 0x25c   :  { %v397_v25 = vmul.f32 %v3041_v23, %v395_v24 }
 0x25e   :  { %399 = vrot.lane.b32.xlu0 %v397_v25, %s3484_s23 }
 0x2d0   :  { %v400_v27 = vpop.permute.xlu0 %399 }
 0x2d1   :  { %v402_v28 = vadd.f32 %v400_v27, %v392_v26 }
 0x2d3   :  { %3042 = vtanh.f32 %v402_v28  ;;  %v496_v44 = vrot.slane %v402_v28, 6 }
 0x2dd   :  { %v3043_v29 = vpop.eup %3042 }
 0x2de   :  { %405 = vrot.lane.b32.xlu1 %v3043_v29, %s3483_s3 }
 0x350   :  { %v406_v30 = vpop.permute.xlu1 %405 }
 0x351   :  { %v3801_v31 = vmul.f32 %v3041_v23, %v406_v30 }
 0x353   :  { %410 = vrot.lane.b32.xlu1 %v3801_v31, %s3484_s23 }
 0x3c5   :  { %v411_v32 = vpop.permute.xlu1 %410 }
 0x3c6   :  { %2695 = vmatmul.mubr.msk.f32.vlgmr.msra.gmra.mrb[2].mxu0 %vm310_vm3, %v411_v32 }
 0x3c7   :  { %2916 = vmatpush3.bf16.msra.mxu0 %v3757_v5  ;;  %2716 = vmatprep.mubr.msk.f32.mxu0 %vm3481_vm0, %v3482_v1 }
 0x3c8   :  { %2917 = vmatprep.subr.bf16.mxu0 %v3480_v0 }
 0x3cb   :  { %2919 = vmatpush3.bf16.msra.mxu0 %v3774_v10 }
 0x3cc   :  { %2926 = vmatprep.subr.bf16.mxu0 %v3480_v0 }
 0x499   :  { %v480_v33 = vpop.f32.mrb[2].mxu0 }
 0x49a   :  { %v485_v34 = vrot.slane %v480_v33, 6  ;;  %v2696_v35 = vpop.f32.mrb[3].mxu0 }
 0x49c   :  { %v487_v36 = vadd.f32 %v485_v34, %v3795_v15 }
 0x49e   :  { %3044 = vtanh.f32 %v487_v36  ;;  %v2521_v38 = vmul.f32 -1.442695, %v487_v36 }
 0x4a0   :  { %3046 = vpow2.f32 %v2521_v38 }
 0x4a8   :  { %v3045_v37 = vpop.eup %3044 }
 0x4a9   :  { %500 = vrot.lane.b32.xlu0 %v3045_v37, %s3483_s3 }
 0x4aa   :  { %v3047_v39 = vpop.eup %3046 }
 0x4ab   :  { %v491_v40 = vadd.f32 1.0, %v3047_v39 }
 0x4ad   :  { %3048 = vrcp.f32 %v491_v40 }
 0x4b7   :  { %v3049_v41 = vpop.eup %3048 }
 0x4b8   :  { %v498_v45 = vmul.f32 %v3049_v41, %v496_v44 }
 0x51b   :  { %v501_v42 = vpop.permute.xlu0 %500 }
 0x51c   :  { %v503_v43 = vmul.f32 %v3049_v41, %v501_v42 }
 0x51e   :  { %505 = vrot.lane.b32.xlu1 %v503_v43, %s3484_s23 }
 0x590   :  { %v506_v46 = vpop.permute.xlu1 %505 }
 0x591   :  { %v508_v47 = vadd.f32 %v506_v46, %v498_v45 }
 0x593   :  { %3050 = vtanh.f32 %v508_v47  ;;  %v603_v2 = vrot.slane %v508_v47, 6 }
 0x59d   :  { %v3051_v48 = vpop.eup %3050 }
 0x59e   :  { %511 = vrot.lane.b32.xlu0 %v3051_v48, %s3483_s3 }
 0x610   :  { %v512_v49 = vpop.permute.xlu0 %511 }
 0x611   :  { %v514_v50 = vmul.f32 %v3049_v41, %v512_v49 }
 0x613   :  { %v516_v51 = vrot.slane %v514_v50, 2  ;;  %v1154_v11 = vsel %vm1153_vm4, %v3801_v31, %v514_v50 }
 0x615   :  { %517 = vrot.lane.b32.xlu1 %v516_v51, %s3484_s23 }
 0x687   :  { %v518_v52 = vpop.permute.xlu1 %517 }
 0x688   :  { %2706 = vmatmul.mubr.msk.f32.vlgmr.msra.gmra.mrb[2].mxu1 %vm310_vm3, %v518_v52 }
 0x689   :  { %2922 = vmatpush3.bf16.msra.mxu1 %v3757_v5  ;;  %2727 = vmatprep.mubr.msk.f32.mxu1 %vm3481_vm0, %v3482_v1 }
 0x68a   :  { %2923 = vmatprep.subr.bf16.mxu1 %v3480_v0 }
 0x68d   :  { %2925 = vmatpush3.bf16.msra.mxu1 %v3774_v10 }
 0x68e   :  { %2932 = vmatprep.subr.bf16.mxu1 %v3480_v0 }
 0x75b   :  { %v587_v53 = vpop.f32.mrb[2].mxu1 }
 0x75c   :  { %v592_v54 = vrot.slane %v587_v53, 4  ;;  %v2707_v55 = vpop.f32.mrb[3].mxu1 }
 0x75e   :  { %v594_v56 = vadd.f32 %v592_v54, %v3795_v15 }
 0x760   :  { %3052 = vtanh.f32 %v594_v56  ;;  %v2523_v58 = vmul.f32 -1.442695, %v594_v56 }
 0x762   :  { %3054 = vpow2.f32 %v2523_v58 }
 0x76a   :  { %v3053_v57 = vpop.eup %3052 }
 0x76b   :  { %607 = vrot.lane.b32.xlu0 %v3053_v57, %s3483_s3 }
 0x76c   :  { %v3055_v59 = vpop.eup %3054 }
 0x76d   :  { %v598_v60 = vadd.f32 1.0, %v3055_v59 }
 0x76f   :  { %3056 = vrcp.f32 %v598_v60 }
 0x779   :  { %v3057_v61 = vpop.eup %3056 }
 0x77a   :  { %v605_v3 = vmul.f32 %v3057_v61, %v603_v2 }
 0x7dd   :  { %v608_v62 = vpop.permute.xlu0 %607 }
 0x7de   :  { %v610_v63 = vmul.f32 %v3057_v61, %v608_v62 }
 0x7e0   :  { %612 = vrot.lane.b32.xlu1 %v610_v63, %s3484_s23 }
 0x852   :  { %v613_v4 = vpop.permute.xlu1 %612 }
 0x853   :  { %v615_v6 = vadd.f32 %v613_v4, %v605_v3 }
 0x855   :  { %3058 = vtanh.f32 %v615_v6  ;;  %v710_v28 = vrot.slane %v615_v6, 6 }
 0x85f   :  { %v3059_v7 = vpop.eup %3058 }
 0x860   :  { %618 = vrot.lane.b32.xlu0 %v3059_v7, %s3483_s3 }
 0x8d2   :  { %v619_v8 = vpop.permute.xlu0 %618 }
 0x8d3   :  { %v621_v9 = vmul.f32 %v3057_v61, %v619_v8 }
 0x8d5   :  { %v623_v12 = vrot.slane %v621_v9, 4  ;;  %v1155_v14 = vsel %vm227_vm1, %v1154_v11, %v621_v9 }
 0x8d7   :  { %624 = vrot.lane.b32.xlu1 %v623_v12, %s3484_s23 }
 0x949   :  { %v625_v16 = vpop.permute.xlu1 %624 }
 0x94a   :  { %2717 = vmatmul.mubr.msk.f32.vlgmr.msra.gmra.mrb[4].mxu0 %vm310_vm3, %v625_v16 }
 0x94b   :  { %2928 = vmatpush3.bf16.msra.mxu0 %v3757_v5  ;;  %2738 = vmatprep.mubr.msk.f32.mxu0 %vm3481_vm0, %v3482_v1 }
 0x94c   :  { %2929 = vmatprep.subr.bf16.mxu0 %v3480_v0 }
 0x94f   :  { %2931 = vmatpush3.bf16.msra.mxu0 %v3774_v10 }
 0x950   :  { %2938 = vmatprep.subr.bf16.mxu0 %v3480_v0 }
 0xa1d   :  { %v694_v17 = vpop.f32.mrb[4].mxu0 }
 0xa1e   :  { %v699_v18 = vrot.slane %v694_v17, 2  ;;  %v2718_v19 = vpop.f32.mrb[5].mxu0 }
 0xa20   :  { %v701_v20 = vadd.f32 %v699_v18, %v3795_v15 }
 0xa22   :  { %3060 = vtanh.f32 %v701_v20  ;;  %v2525_v22 = vmul.f32 -1.442695, %v701_v20 }
 0xa24   :  { %3062 = vpow2.f32 %v2525_v22 }
 0xa2c   :  { %v3061_v21 = vpop.eup %3060 }
 0xa2d   :  { %714 = vrot.lane.b32.xlu0 %v3061_v21, %s3483_s3 }
 0xa2e   :  { %v3063_v23 = vpop.eup %3062 }
 0xa2f   :  { %v705_v24 = vadd.f32 1.0, %v3063_v23 }
 0xa31   :  { %3064 = vrcp.f32 %v705_v24 }
 0xa3b   :  { %v3065_v25 = vpop.eup %3064 }
 0xa3c   :  { %v712_v29 = vmul.f32 %v3065_v25, %v710_v28 }
 0xa9f   :  { %v715_v26 = vpop.permute.xlu0 %714 }
 0xaa0   :  { %v717_v27 = vmul.f32 %v3065_v25, %v715_v26 }
 0xaa2   :  { %719 = vrot.lane.b32.xlu1 %v717_v27, %s3484_s23 }
 0xb14   :  { %v720_v30 = vpop.permute.xlu1 %719 }
 0xb15   :  { %v722_v31 = vadd.f32 %v720_v30, %v712_v29 }
 0xb17   :  { %3066 = vtanh.f32 %v722_v31  ;;  %v814_v47 = vrot.slane %v722_v31, 6 }
 0xb21   :  { %v3067_v15 = vpop.eup %3066 }
 0xb22   :  { %725 = vrot.lane.b32.xlu0 %v3067_v15, %s3483_s3 }
 0xb94   :  { %v726_v32 = vpop.permute.xlu0 %725 }
 0xb95   :  { %v728_v33 = vmul.f32 %v3065_v25, %v726_v32 }
 0xb97   :  { %v730_v34 = vrot.slane %v728_v33, 6  ;;  %v3844_v35 = vsel %vm1156_vm5, %v1155_v14, %v728_v33 }
 0xb99   :  { %731 = vrot.lane.b32.xlu1 %v730_v34, %s3484_s23 }
 0xc0b   :  { %v732_v36 = vpop.permute.xlu1 %731 }
 0xc0c   :  { %2728 = vmatmul.mubr.msk.f32.vlgmr.msra.gmra.mrb[4].mxu1 %vm310_vm3, %v732_v36 }
 0xc0d   :  { %2934 = vmatpush3.bf16.msra.mxu1 %v3757_v5  ;;  %2749 = vmatprep.mubr.msk.f32.mxu1 %vm3481_vm0, %v3482_v1 }
 0xc0e   :  { %2935 = vmatprep.subr.bf16.mxu1 %v3480_v0 }
 0xc11   :  { %2937 = vmatpush3.bf16.msra.mxu1 %v3774_v10 }
 0xcdf   :  { %v801_v37 = vpop.f32.mrb[4].mxu1 }
 0xce0   :  { %v805_v38 = vadd.f32 %v801_v37, %v3793_v13  ;;  %v2729_v39 = vpop.f32.mrb[5].mxu1 }
 0xce2   :  { %3068 = vtanh.f32 %v805_v38  ;;  %v2527_v41 = vmul.f32 -1.442695, %v805_v38 }
 0xce4   :  { %3070 = vpow2.f32 %v2527_v41 }
 0xcec   :  { %v3069_v40 = vpop.eup %3068 }
 0xced   :  { %818 = vrot.lane.b32.xlu0 %v3069_v40, %s3483_s3 }
 0xcee   :  { %v3071_v42 = vpop.eup %3070 }
 0xcef   :  { %v809_v43 = vadd.f32 1.0, %v3071_v42 }
 0xcf1   :  { %3072 = vrcp.f32 %v809_v43 }
 0xcfb   :  { %v3073_v44 = vpop.eup %3072 }
 0xcfc   :  { %v816_v48 = vmul.f32 %v3073_v44, %v814_v47 }
 0xd5f   :  { %v819_v45 = vpop.permute.xlu0 %818 }
 0xd60   :  { %v821_v46 = vmul.f32 %v3073_v44, %v819_v45 }
 0xd62   :  { %823 = vrot.lane.b32.xlu1 %v821_v46, %s3484_s23 }
 0xdd4   :  { %v824_v49 = vpop.permute.xlu1 %823 }
 0xdd5   :  { %v826_v50 = vadd.f32 %v824_v49, %v816_v48 }
 0xdd7   :  { %3074 = vtanh.f32 %v826_v50 }
 0xde1   :  { %v3075_v51 = vpop.eup %3074 }
 0xde2   :  { %829 = vrot.lane.b32.xlu0 %v3075_v51, %s3483_s3 }
 0xe54   :  { %v830_v52 = vpop.permute.xlu0 %829 }
 0xe55   :  { %v3857_v53 = vmul.f32 %v3073_v44, %v830_v52  ;;  %v1161_v52 = vld [vmem:[%s4117_s24] sm:$0xff] }
 0xe57   :  { %834 = vrot.lane.b32.xlu1 %v3857_v53, %s3484_s23 }
 0xec9   :  { %v835_v54 = vpop.permute.xlu1 %834 }
 0xeca   :  { %2739 = vmatmul.mubr.msk.f32.vlgmr.msra.gmra.mrb[6].mxu0 %vm310_vm3, %v835_v54  ;;  %v1257_v54 = vld [vmem:[#allocation8] sm:$0xff] }
 0xecb   :  { %2940 = vmatpush3.bf16.msra.mxu0 %v3757_v5  ;;  %2760 = vmatprep.mubr.msk.f32.mxu0 %vm3481_vm0, %v3482_v1 }
 0xecc   :  { %2941 = vmatprep.subr.bf16.mxu0 %v3480_v0 }
 0xecf   :  { %2943 = vmatpush3.bf16.msra.mxu0 %v3774_v10  ;;  %v920_v10 = vrot.slane %v826_v50, 6 }
 0xed0   :  { %2952 = vmatprep.subr.bf16.mxu0 %v3480_v0 }
 0xf9d   :  { %v904_v55 = vpop.f32.mrb[6].mxu0 }
 0xf9e   :  { %v909_v56 = vrot.slane %v904_v55, 6  ;;  %v2740_v57 = vpop.f32.mrb[7].mxu0 }
 0xf9f   :  { %v1164_v57 = vld [vmem:[%s4117_s24 + $0x18] sm:$0xff] }
 0xfa0   :  { %v911_v58 = vadd.f32 %v909_v56, %v3793_v13  ;;  %v1258_v56 = vld [vmem:[#allocation8 + $0x8] sm:$0xff] }
 0xfa2   :  { %3076 = vtanh.f32 %v911_v58  ;;  %v2529_v60 = vmul.f32 -1.442695, %v911_v58  ;;  %v3903_v58 = vpack.c.bf16 %v1258_v56, %v1257_v54 }
 0xfa4   :  { %3078 = vpow2.f32 %v2529_v60  ;;  %v1259_v60 = vld [vmem:[#allocation8 + $0x10] sm:$0xff] }
 0xfac   :  { %v3077_v59 = vpop.eup %3076 }
 0xfad   :  { %924 = vrot.lane.b32.xlu0 %v3077_v59, %s3483_s3 }
 0xfae   :  { %v3079_v5 = vpop.eup %3078 }
 0xfaf   :  { %v915_v61 = vadd.f32 1.0, %v3079_v5  ;;  %v1260_v5 = vld [vmem:[#allocation8 + $0x18] sm:$0xff] }
 0xfb1   :  { %3080 = vrcp.f32 %v915_v61  ;;  %v3906_v61 = vpack.c.bf16 %v1260_v5, %v1259_v60 }
 0xfbb   :  { %v3081_v62 = vpop.eup %3080 }
 0xfbc   :  { %v922_v3 = vmul.f32 %v3081_v62, %v920_v10 }
0x101f   :  { %v925_v63 = vpop.permute.xlu0 %924 }
0x1020   :  { %v927_v2 = vmul.f32 %v3081_v62, %v925_v63 }
0x1022   :  { %929 = vrot.lane.b32.xlu1 %v927_v2, %s3484_s23 }
0x1094   :  { %v930_v4 = vpop.permute.xlu1 %929 }
0x1095   :  { %v932_v6 = vadd.f32 %v930_v4, %v922_v3 }
0x1097   :  { %3082 = vtanh.f32 %v932_v6  ;;  %v1027_v26 = vrot.slane %v932_v6, 6 }
0x10a1   :  { %v3083_v7 = vpop.eup %3082 }
0x10a2   :  { %935 = vrot.lane.b32.xlu0 %v3083_v7, %s3483_s3  ;;  %v2534_v7 = vld [vmem:[#allocation10] ss:$0 sm:$0xff] }
0x1114   :  { %v936_v8 = vpop.permute.xlu0 %935 }
0x1115   :  { %v938_v9 = vmul.f32 %v3081_v62, %v936_v8 }
0x1117   :  { %v940_v11 = vrot.slane %v938_v9, 2  ;;  %v1158_v32 = vsel %vm1153_vm4, %v3857_v53, %v938_v9  ;;  %v1162_v53 = vld [vmem:[%s4117_s24 + $0x8] sm:$0xff] }
0x1118   :  { %v2944_v55 = vpack.c.bf16 %v1162_v53, %v1161_v52 }
0x1119   :  { %941 = vrot.lane.b32.xlu1 %v940_v11, %s3484_s23 }
0x111a   :  { %2945 = vmatprep.subr.bf16.mxu1 %v2944_v55 }
0x118b   :  { %v942_v12 = vpop.permute.xlu1 %941 }
0x118c   :  { %2750 = vmatmul.mubr.msk.f32.vlgmr.msra.gmra.mrb[6].mxu1 %vm310_vm3, %v942_v12 }
0x118d   :  { %2947 = vmatpush3.bf16.msra.mxu1 %v2944_v55 }
0x125f   :  { %v1011_v14 = vpop.f32.mrb[6].mxu1 }
0x1260   :  { %v1016_v16 = vrot.slane %v1011_v14, 4  ;;  %v2751_v17 = vpop.f32.mrb[7].mxu1 }
0x1262   :  { %v1018_v18 = vadd.f32 %v1016_v16, %v3793_v13 }
0x1264   :  { %3084 = vtanh.f32 %v1018_v18  ;;  %v2531_v20 = vmul.f32 -1.442695, %v1018_v18 }
0x1266   :  { %3086 = vpow2.f32 %v2531_v20 }
0x126e   :  { %v3085_v19 = vpop.eup %3084 }
0x126f   :  { %1031 = vrot.lane.b32.xlu0 %v3085_v19, %s3483_s3 }
0x1270   :  { %v3087_v21 = vpop.eup %3086 }
0x1271   :  { %v1022_v22 = vadd.f32 1.0, %v3087_v21 }
0x1273   :  { %3088 = vrcp.f32 %v1022_v22 }
0x127d   :  { %v3089_v23 = vpop.eup %3088 }
0x127e   :  { %v1029_v27 = vmul.f32 %v3089_v23, %v1027_v26 }
0x12e1   :  { %v1032_v24 = vpop.permute.xlu0 %1031 }
0x12e2   :  { %v1034_v25 = vmul.f32 %v3089_v23, %v1032_v24 }
0x12e4   :  { %1036 = vrot.lane.b32.xlu1 %v1034_v25, %s3484_s23 }
0x1356   :  { %v1037_v28 = vpop.permute.xlu1 %1036 }
0x1357   :  { %v1039_v29 = vadd.f32 %v1037_v28, %v1029_v27 }
0x1359   :  { %3090 = vtanh.f32 %v1039_v29  ;;  %v1134_v48 = vrot.slane %v1039_v29, 6 }
0x1363   :  { %v3091_v30 = vpop.eup %3090 }
0x1364   :  { %1042 = vrot.lane.b32.xlu0 %v3091_v30, %s3483_s3 }
0x13d6   :  { %v1043_v31 = vpop.permute.xlu0 %1042 }
0x13d7   :  { %v1045_v15 = vmul.f32 %v3089_v23, %v1043_v31 }
0x13d9   :  { %v1047_v33 = vrot.slane %v1045_v15, 4  ;;  %v1159_v34 = vsel %vm227_vm1, %v1158_v32, %v1045_v15 }
0x13db   :  { %1048 = vrot.lane.b32.xlu1 %v1047_v33, %s3484_s23 }
0x144d   :  { %v1049_v36 = vpop.permute.xlu1 %1048 }
0x144e   :  { %2761 = vmatmul.mubr.msk.f32.vlgmr.msra.gmra.mrb[8].mxu0 %vm310_vm3, %v1049_v36 }
0x144f   :  { %2782 = vmatprep.mubr.msk.f32.mxu0 %vm3481_vm0, %v3482_v1  ;;  %2954 = vmatpush3.bf16.msra.mxu0 %v3903_v58 }
0x1450   :  { %2955 = vmatprep.subr.bf16.mxu0 %v3480_v0 }
0x1453   :  { %2957 = vmatpush3.bf16.msra.mxu0 %v3906_v61 }
0x1454   :  { %2964 = vmatprep.subr.bf16.mxu0 %v3480_v0 }
0x1456   :  { %2783 = vmatmul.mubr.f32.vlgmr.msra.gmra.mrb[10].mxu0 %v3482_v1 }
0x1457   :  { %2966 = vmatpush3.bf16.msra.mxu0 %v3903_v58  ;;  %2804 = vmatprep.mubr.msk.f32.mxu0 %vm3481_vm0, %v3482_v1 }
0x1458   :  { %2967 = vmatprep.subr.bf16.mxu0 %v3480_v0 }
0x145b   :  { %2969 = vmatpush3.bf16.msra.mxu0 %v3906_v61 }
0x145c   :  { %2976 = vmatprep.subr.bf16.mxu0 %v3480_v0 }
0x1521   :  { %v1118_v37 = vpop.f32.mrb[8].mxu0 }
0x1522   :  { %v1123_v38 = vrot.slane %v1118_v37, 2  ;;  %v2762_v39 = vpop.f32.mrb[9].mxu0 }
0x1524   :  { %v1125_v40 = vadd.f32 %v1123_v38, %v3793_v13 }
0x1526   :  { %3092 = vtanh.f32 %v1125_v40  ;;  %v2533_v42 = vmul.f32 -1.442695, %v1125_v40 }
0x1528   :  { %3094 = vpow2.f32 %v2533_v42 }
0x1529   :  { %v1327_v4 = vpop.f32.mrb[10].mxu0 }
0x152a   :  { %v2784_v6 = vpop.f32.mrb[11].mxu0 }
0x1530   :  { %v3093_v41 = vpop.eup %3092 }
0x1531   :  { %1138 = vrot.lane.b32.xlu0 %v3093_v41, %s3483_s3 }
0x1532   :  { %v3095_v43 = vpop.eup %3094 }
0x1533   :  { %v1129_v44 = vadd.f32 1.0, %v3095_v43 }
0x1535   :  { %3096 = vrcp.f32 %v1129_v44 }
0x153f   :  { %v3097_v45 = vpop.eup %3096 }
0x1540   :  { %v1136_v49 = vmul.f32 %v3097_v45, %v1134_v48 }
0x15a3   :  { %v1139_v46 = vpop.permute.xlu0 %1138 }
0x15a4   :  { %v1141_v47 = vmul.f32 %v3097_v45, %v1139_v46 }
0x15a6   :  { %1143 = vrot.lane.b32.xlu1 %v1141_v47, %s3484_s23 }
0x15aa   :  { %1174 = vrot.lane.b32.xlu1 %v3844_v35, %s3484_s23  ;;  %v1163_v35 = vld [vmem:[%s4117_s24 + $0x10] sm:$0xff] }
0x15ab   :  { %v2948_v59 = vpack.c.bf16 %v1164_v57, %v1163_v35 }
0x15ad   :  { %2949 = vmatprep.subr.bf16.mxu1 %v2948_v59 }
0x15ae   :  { %2951 = vmatpush3.bf16.msra.mxu1 %v2948_v59 }
0x15af   :  { %2958 = vmatprep.subr.bf16.mxu1 %v3480_v0 }
0x1618   :  { %v1144_v13 = vpop.permute.xlu1 %1143 }
0x1619   :  { %v1146_v50 = vadd.f32 %v1144_v13, %v1136_v49 }
0x161b   :  { %3098 = vtanh.f32 %v1146_v50 }
0x161c   :  { %v1175_v51 = vpop.permute.xlu1 %1174 }
0x161d   :  { %2771 = vmatprep.mubr.msk.f32.mxu1 %vm310_vm3, %v1175_v51 }
0x1625   :  { %v3099_v62 = vpop.eup %3098 }
0x1626   :  { %1149 = vrot.lane.b32.xlu0 %v3099_v62, %s3483_s3 }
0x1698   :  { %v1150_v63 = vpop.permute.xlu0 %1149 }
0x1699   :  { %v1152_v2 = vmul.f32 %v3097_v45, %v1150_v63 }
0x169b   :  { %v1160_v10 = vsel %vm1156_vm5, %v1159_v34, %v1152_v2 }
0x169c   :  { %1176 = vrot.lane.b32.xlu0 %v1160_v10, %s3484_s23 }
0x170e   :  { %v1177_v3 = vpop.permute.xlu0 %1176 }
0x170f   :  { %2772 = vmatmul.mubr.msk.f32.vlgmr.msra.gmra.mrb[8].mxu1 %vm310_vm3, %v1177_v3 }
0x1710   :  { %2960 = vmatpush3.bf16.msra.mxu1 %v3903_v58  ;;  %2793 = vmatprep.mubr.msk.f32.mxu1 %vm3481_vm0, %v3482_v1 }
0x1711   :  { %2961 = vmatprep.subr.bf16.mxu1 %v3480_v0 }
0x1714   :  { %2963 = vmatpush3.bf16.msra.mxu1 %v3906_v61 }
0x1715   :  { %2970 = vmatprep.subr.bf16.mxu1 %v3480_v0 }
0x17e2   :  { %v2773_v8 = vpop.f32.mrb[8].mxu1 }
0x17e3   :  { %v3929_v9 = vadd.f32 %v2773_v8, %v2534_v7  ;;  %v1248_v11 = vpop.f32.mrb[9].mxu1 }
0x17e4   :  { %v3931_v12 = vadd.f32 %v2534_v7, %v1248_v11 }
0x17e6   :  { %v1331_v14 = vadd.f32 %v1327_v4, %v3931_v12 }
0x17e8   :  { %3100 = vtanh.f32 %v1331_v14  ;;  %v2537_v17 = vmul.f32 -1.442695, %v1331_v14 }
0x17ea   :  { %3102 = vpow2.f32 %v2537_v17 }
0x17f2   :  { %v3101_v16 = vpop.eup %3100 }
0x17f3   :  { %1341 = vrot.lane.b32.xlu1 %v3101_v16, %s3483_s3 }
0x17f4   :  { %v3103_v18 = vpop.eup %3102 }
0x17f5   :  { %v1335_v19 = vadd.f32 1.0, %v3103_v18 }
0x17f7   :  { %3104 = vrcp.f32 %v1335_v19 }
0x1801   :  { %v3105_v20 = vpop.eup %3104 }
0x1802   :  { %v1339_v23 = vmul.f32 0.0, %v3105_v20 }
0x1865   :  { %v1342_v21 = vpop.permute.xlu1 %1341 }
0x1866   :  { %v1344_v22 = vmul.f32 %v3105_v20, %v1342_v21 }
0x1868   :  { %1346 = vrot.lane.b32.xlu0 %v1344_v22, %s3484_s23 }
0x18da   :  { %v1347_v24 = vpop.permute.xlu0 %1346 }
0x18db   :  { %v1349_v25 = vadd.f32 %v1347_v24, %v1339_v23 }
0x18dd   :  { %3106 = vtanh.f32 %v1349_v25  ;;  %v1443_v41 = vrot.slane %v1349_v25, 6 }
0x18e7   :  { %v3107_v26 = vpop.eup %3106 }
0x18e8   :  { %1352 = vrot.lane.b32.xlu1 %v3107_v26, %s3483_s3 }
0x195a   :  { %v1353_v27 = vpop.permute.xlu1 %1352 }
0x195b   :  { %v1355_v28 = vmul.f32 %v3105_v20, %v1353_v27 }
0x195d   :  { %1357 = vrot.lane.b32.xlu0 %v1355_v28, %s3484_s23 }
0x19cf   :  { %v1358_v29 = vpop.permute.xlu0 %1357 }
0x19d0   :  { %2794 = vmatmul.mubr.msk.f32.vlgmr.msra.gmra.mrb[10].mxu1 %vm310_vm3, %v1358_v29 }
0x19d1   :  { %2972 = vmatpush3.bf16.msra.mxu1 %v3903_v58  ;;  %2815 = vmatprep.mubr.msk.f32.mxu1 %vm3481_vm0, %v3482_v1 }
0x19d2   :  { %2973 = vmatprep.subr.bf16.mxu1 %v3480_v0 }
0x19d5   :  { %2975 = vmatpush3.bf16.msra.mxu1 %v3906_v61 }
0x19d6   :  { %2982 = vmatprep.subr.bf16.mxu1 %v3480_v0 }
0x1aa3   :  { %v1427_v30 = vpop.f32.mrb[10].mxu1 }
0x1aa4   :  { %v1432_v31 = vrot.slane %v1427_v30, 6  ;;  %v2795_v15 = vpop.f32.mrb[11].mxu1 }
0x1aa6   :  { %v1434_v32 = vadd.f32 %v1432_v31, %v3931_v12 }
0x1aa8   :  { %3108 = vtanh.f32 %v1434_v32  ;;  %v2539_v34 = vmul.f32 -1.442695, %v1434_v32 }
0x1aaa   :  { %3110 = vpow2.f32 %v2539_v34 }
0x1ab2   :  { %v3109_v33 = vpop.eup %3108 }
0x1ab3   :  { %1447 = vrot.lane.b32.xlu1 %v3109_v33, %s3483_s3 }
0x1ab4   :  { %v3111_v36 = vpop.eup %3110 }
0x1ab5   :  { %v1438_v37 = vadd.f32 1.0, %v3111_v36 }
0x1ab7   :  { %3112 = vrcp.f32 %v1438_v37 }
0x1ac1   :  { %v3113_v38 = vpop.eup %3112 }
0x1ac2   :  { %v1445_v42 = vmul.f32 %v3113_v38, %v1443_v41 }
0x1b25   :  { %v1448_v39 = vpop.permute.xlu1 %1447 }
0x1b26   :  { %v1450_v40 = vmul.f32 %v3113_v38, %v1448_v39 }
0x1b28   :  { %1452 = vrot.lane.b32.xlu0 %v1450_v40, %s3484_s23 }
0x1b9a   :  { %v1453_v43 = vpop.permute.xlu0 %1452 }
0x1b9b   :  { %v1455_v44 = vadd.f32 %v1453_v43, %v1445_v42 }
0x1b9d   :  { %3114 = vtanh.f32 %v1455_v44  ;;  %v1550_v60 = vrot.slane %v1455_v44, 6 }
0x1ba7   :  { %v3115_v45 = vpop.eup %3114 }
0x1ba8   :  { %1458 = vrot.lane.b32.xlu1 %v3115_v45, %s3483_s3 }
0x1c1a   :  { %v1459_v46 = vpop.permute.xlu1 %1458 }
0x1c1b   :  { %v1461_v47 = vmul.f32 %v3113_v38, %v1459_v46 }
0x1c1d   :  { %v1463_v48 = vrot.slane %v1461_v47, 2 }
0x1c1f   :  { %1464 = vrot.lane.b32.xlu0 %v1463_v48, %s3484_s23 }
0x1c91   :  { %v1465_v49 = vpop.permute.xlu0 %1464 }
0x1c92   :  { %2805 = vmatmul.mubr.msk.f32.vlgmr.msra.gmra.mrb[12].mxu0 %vm310_vm3, %v1465_v49 }
0x1c93   :  { %2978 = vmatpush3.bf16.msra.mxu0 %v3903_v58  ;;  %2826 = vmatprep.mubr.msk.f32.mxu0 %vm3481_vm0, %v3482_v1 }
0x1c94   :  { %2979 = vmatprep.subr.bf16.mxu0 %v3480_v0 }
0x1c97   :  { %2981 = vmatpush3.bf16.msra.mxu0 %v3906_v61 }
0x1c98   :  { %2988 = vmatprep.subr.bf16.mxu0 %v3480_v0 }
0x1d65   :  { %v1534_v13 = vpop.f32.mrb[12].mxu0 }
0x1d66   :  { %v1539_v50 = vrot.slane %v1534_v13, 4  ;;  %v2806_v51 = vpop.f32.mrb[13].mxu0 }
0x1d68   :  { %v1541_v52 = vadd.f32 %v1539_v50, %v3931_v12 }
0x1d6a   :  { %3116 = vtanh.f32 %v1541_v52  ;;  %v2541_v54 = vmul.f32 -1.442695, %v1541_v52 }
0x1d6c   :  { %3118 = vpow2.f32 %v2541_v54 }
0x1d74   :  { %v3117_v53 = vpop.eup %3116 }
0x1d75   :  { %1554 = vrot.lane.b32.xlu1 %v3117_v53, %s3483_s3 }
0x1d76   :  { %v3119_v55 = vpop.eup %3118 }
0x1d77   :  { %v1545_v56 = vadd.f32 1.0, %v3119_v55 }
0x1d79   :  { %3120 = vrcp.f32 %v1545_v56 }
0x1d83   :  { %v3121_v35 = vpop.eup %3120 }
0x1d84   :  { %v1552_v5 = vmul.f32 %v3121_v35, %v1550_v60 }
0x1de7   :  { %v1555_v57 = vpop.permute.xlu1 %1554 }
0x1de8   :  { %v1557_v59 = vmul.f32 %v3121_v35, %v1555_v57 }
0x1dea   :  { %1559 = vrot.lane.b32.xlu0 %v1557_v59, %s3484_s23 }
0x1e5c   :  { %v1560_v62 = vpop.permute.xlu0 %1559 }
0x1e5d   :  { %v1562_v63 = vadd.f32 %v1560_v62, %v1552_v5 }
0x1e5f   :  { %3122 = vtanh.f32 %v1562_v63  ;;  %v1657_v23 = vrot.slane %v1562_v63, 6 }
0x1e69   :  { %v3123_v2 = vpop.eup %3122 }
0x1e6a   :  { %1565 = vrot.lane.b32.xlu1 %v3123_v2, %s3483_s3 }
0x1edc   :  { %v1566_v10 = vpop.permute.xlu1 %1565 }
0x1edd   :  { %v1568_v3 = vmul.f32 %v3121_v35, %v1566_v10 }
0x1edf   :  { %v1570_v4 = vrot.slane %v1568_v3, 4 }
0x1ee1   :  { %1571 = vrot.lane.b32.xlu0 %v1570_v4, %s3484_s23 }
0x1f53   :  { %v1572_v6 = vpop.permute.xlu0 %1571 }
0x1f54   :  { %2816 = vmatmul.mubr.msk.f32.vlgmr.msra.gmra.mrb[12].mxu1 %vm310_vm3, %v1572_v6 }
0x1f55   :  { %2984 = vmatpush3.bf16.msra.mxu1 %v3903_v58  ;;  %2837 = vmatprep.mubr.msk.f32.mxu1 %vm3481_vm0, %v3482_v1 }
0x1f56   :  { %2985 = vmatprep.subr.bf16.mxu1 %v3480_v0 }
0x1f59   :  { %2987 = vmatpush3.bf16.msra.mxu1 %v3906_v61 }
0x1f5a   :  { %2994 = vmatprep.subr.bf16.mxu1 %v3480_v0 }
0x2027   :  { %v1641_v7 = vpop.f32.mrb[12].mxu1 }
0x2028   :  { %v1646_v8 = vrot.slane %v1641_v7, 2  ;;  %v2817_v11 = vpop.f32.mrb[13].mxu1 }
0x202a   :  { %v1648_v14 = vadd.f32 %v1646_v8, %v3931_v12 }
0x202c   :  { %3124 = vtanh.f32 %v1648_v14  ;;  %v2543_v17 = vmul.f32 -1.442695, %v1648_v14 }
0x202e   :  { %3126 = vpow2.f32 %v2543_v17 }
0x2036   :  { %v3125_v16 = vpop.eup %3124 }
0x2037   :  { %1661 = vrot.lane.b32.xlu1 %v3125_v16, %s3483_s3 }
0x2038   :  { %v3127_v18 = vpop.eup %3126 }
0x2039   :  { %v1652_v19 = vadd.f32 1.0, %v3127_v18 }
0x203b   :  { %3128 = vrcp.f32 %v1652_v19 }
0x2045   :  { %v3129_v20 = vpop.eup %3128 }
0x2046   :  { %v1659_v24 = vmul.f32 %v3129_v20, %v1657_v23 }
0x20a9   :  { %v1662_v21 = vpop.permute.xlu1 %1661 }
0x20aa   :  { %v1664_v22 = vmul.f32 %v3129_v20, %v1662_v21 }
0x20ac   :  { %1666 = vrot.lane.b32.xlu0 %v1664_v22, %s3484_s23 }
0x211e   :  { %v1667_v25 = vpop.permute.xlu0 %1666 }
0x211f   :  { %v1669_v26 = vadd.f32 %v1667_v25, %v1659_v24 }
0x2121   :  { %3130 = vtanh.f32 %v1669_v26  ;;  %v1761_v41 = vrot.slane %v1669_v26, 6 }
0x212b   :  { %v3131_v12 = vpop.eup %3130 }
0x212c   :  { %1672 = vrot.lane.b32.xlu1 %v3131_v12, %s3483_s3 }
0x219e   :  { %v1673_v27 = vpop.permute.xlu1 %1672 }
0x219f   :  { %v1675_v28 = vmul.f32 %v3129_v20, %v1673_v27 }
0x21a1   :  { %v1677_v29 = vrot.slane %v1675_v28, 6 }
0x21a3   :  { %1678 = vrot.lane.b32.xlu0 %v1677_v29, %s3484_s23 }
0x2215   :  { %v1679_v30 = vpop.permute.xlu0 %1678 }
0x2216   :  { %2827 = vmatmul.mubr.msk.f32.vlgmr.msra.gmra.mrb[14].mxu0 %vm310_vm3, %v1679_v30 }
0x2217   :  { %2990 = vmatpush3.bf16.msra.mxu0 %v3903_v58  ;;  %2848 = vmatprep.mubr.msk.f32.mxu0 %vm3481_vm0, %v3482_v1 }
0x2218   :  { %2991 = vmatprep.subr.bf16.mxu0 %v3480_v0 }
0x221b   :  { %2993 = vmatpush3.bf16.msra.mxu0 %v3906_v61 }
0x221c   :  { %2862 = vmatprep.subr.mxu0 %v3482_v1 }
0x22e9   :  { %v1748_v31 = vpop.f32.mrb[14].mxu0 }
0x22ea   :  { %v1752_v15 = vadd.f32 %v1748_v31, %v3929_v9  ;;  %v2828_v32 = vpop.f32.mrb[15].mxu0 }
0x22ec   :  { %3132 = vtanh.f32 %v1752_v15  ;;  %v2545_v34 = vmul.f32 -1.442695, %v1752_v15 }
0x22ee   :  { %3134 = vpow2.f32 %v2545_v34 }
0x22f6   :  { %v3133_v33 = vpop.eup %3132 }
0x22f7   :  { %1765 = vrot.lane.b32.xlu1 %v3133_v33, %s3483_s3 }
0x22f8   :  { %v3135_v36 = vpop.eup %3134 }
0x22f9   :  { %v1756_v37 = vadd.f32 1.0, %v3135_v36 }
0x22fb   :  { %3136 = vrcp.f32 %v1756_v37 }
0x2305   :  { %v3137_v38 = vpop.eup %3136 }
0x2306   :  { %v1763_v42 = vmul.f32 %v3137_v38, %v1761_v41  ;;  %v2100_v41 = vld [vmem:[#allocation2] sm:$0x3] }
0x2369   :  { %v1766_v39 = vpop.permute.xlu1 %1765 }
0x236a   :  { %v1768_v40 = vmul.f32 %v3137_v38, %v1766_v39  ;;  %v2555_v39 = vld [vmem:[#allocation14] ss:$0 sm:$0xff] }
0x236c   :  { %1770 = vrot.lane.b32.xlu0 %v1768_v40, %s3484_s23  ;;  %v2101_v40 = vld [vmem:[#allocation11] sm:$0x3f] }
0x23de   :  { %v1771_v43 = vpop.permute.xlu0 %1770 }
0x23df   :  { %v1773_v44 = vadd.f32 %v1771_v43, %v1763_v42 }
0x23e1   :  { %3138 = vtanh.f32 %v1773_v44 }
0x23eb   :  { %v3139_v45 = vpop.eup %3138 }
0x23ec   :  { %1776 = vrot.lane.b32.xlu1 %v3139_v45, %s3483_s3 }
0x245e   :  { %v1777_v46 = vpop.permute.xlu1 %1776 }
0x245f   :  { %v1779_v47 = vmul.f32 %v3137_v38, %v1777_v46  ;;  %v2556_v46 = vld [vmem:[#allocation16] ss:$0 sm:$0xff] }
0x2461   :  { %1781 = vrot.lane.b32.xlu0 %v1779_v47, %s3484_s23  ;;  %v2226_v47 = vld [vmem:[%s4090_s14] sm:$0xff] }
0x24d3   :  { %v1782_v48 = vpop.permute.xlu0 %1781 }
0x24d4   :  { %2838 = vmatmul.mubr.msk.f32.vlgmr.msra.gmra.mrb[14].mxu1 %vm310_vm3, %v1782_v48  ;;  %v2227_v48 = vld [vmem:[%s4090_s14 + $0x8] sm:$0xff] }
0x24d5   :  { %2996 = vmatpush3.bf16.msra.mxu1 %v3903_v58  ;;  %2859 = vmatprep.mubr.msk.f32.mxu1 %vm3481_vm0, %v3482_v1 }
0x24d6   :  { %2997 = vmatprep.subr.bf16.mxu1 %v3480_v0 }
0x24d9   :  { %2999 = vmatpush3.bf16.msra.mxu1 %v3906_v61  ;;  %v1867_v61 = vrot.slane %v1773_v44, 6 }
0x24da   :  { %3003 = vmatprep.subr.bf16.mxu1 %v3480_v0 }
0x25a7   :  { %v1851_v49 = vpop.f32.mrb[14].mxu1 }
0x25a8   :  { %v1856_v13 = vrot.slane %v1851_v49, 6  ;;  %v2839_v50 = vpop.f32.mrb[15].mxu1  ;;  %v2230_v49 = vld [vmem:[%s4091_s15] sm:$0xff] }
0x25a9   :  { %v2231_v50 = vld [vmem:[%s4091_s15 + $0x8] sm:$0xff] }
0x25aa   :  { %v1858_v51 = vadd.f32 %v1856_v13, %v3929_v9  ;;  %v3004_v13 = vpack.c.bf16 %v2227_v48, %v2226_v47 }
0x25ac   :  { %3140 = vtanh.f32 %v1858_v51  ;;  %v2547_v53 = vmul.f32 -1.442695, %v1858_v51  ;;  %v2228_v51 = vld [vmem:[%s4090_s14 + $0x10] sm:$0xff] }
0x25ae   :  { %3142 = vpow2.f32 %v2547_v53  ;;  %v3001_v53 = vpack.c.bf16 %v2231_v50, %v2230_v49 }
0x25b6   :  { %v3141_v52 = vpop.eup %3140 }
0x25b7   :  { %1871 = vrot.lane.b32.xlu1 %v3141_v52, %s3483_s3  ;;  %v2229_v52 = vld [vmem:[%s4090_s14 + $0x18] sm:$0xff] }
0x25b8   :  { %v3143_v58 = vpop.eup %3142 }
0x25b9   :  { %v1862_v54 = vadd.f32 1.0, %v3143_v58  ;;  %v3007_v58 = vpack.c.bf16 %v2229_v52, %v2228_v51 }
0x25bb   :  { %3144 = vrcp.f32 %v1862_v54 }
0x25c5   :  { %v3145_v55 = vpop.eup %3144 }
0x25c6   :  { %v1869_v57 = vmul.f32 %v3145_v55, %v1867_v61 }
0x2629   :  { %v1872_v56 = vpop.permute.xlu1 %1871 }
0x262a   :  { %v1874_v35 = vmul.f32 %v3145_v55, %v1872_v56 }
0x262c   :  { %1876 = vrot.lane.b32.xlu0 %v1874_v35, %s3484_s23 }
0x269e   :  { %v1877_v59 = vpop.permute.xlu0 %1876 }
0x269f   :  { %v1879_v60 = vadd.f32 %v1877_v59, %v1869_v57  ;;  %v2557_v57 = vld [vmem:[#allocation17] ss:$0 sm:$0xff] }
0x26a1   :  { %3146 = vtanh.f32 %v1879_v60  ;;  %v1974_v20 = vrot.slane %v1879_v60, 6  ;;  %v2558_v60 = vld [vmem:[#allocation19] ss:$0 sm:$0xff] }
0x26ab   :  { %v3147_v5 = vpop.eup %3146 }
0x26ac   :  { %1882 = vrot.lane.b32.xlu1 %v3147_v5, %s3483_s3 }
0x271e   :  { %v1883_v62 = vpop.permute.xlu1 %1882 }
0x271f   :  { %v1885_v63 = vmul.f32 %v3145_v55, %v1883_v62  ;;  %v2552_v55 = vld [vmem:[#allocation13] ss:$0 sm:$0xff] }
0x2721   :  { %v1887_v2 = vrot.slane %v1885_v63, 2 }
0x2723   :  { %1888 = vrot.lane.b32.xlu0 %v1887_v2, %s3484_s23 }
0x2795   :  { %v1889_v10 = vpop.permute.xlu0 %1888 }
0x2796   :  { %2849 = vmatmul.mubr.msk.f32.vlgmr.msra.gmra.mrb[16].mxu0 %vm310_vm3, %v1889_v10 }
0x2797   :  { %2864 = vmatprep.mubr.msk.f32.mxu0 %vm3481_vm0, %v3482_v1  ;;  %2863 = vmatpush3.msk.msra.mxu0 %vm1156_vm5, %v2101_v40 }
0x2798   :  { %3000 = vmatprep.subr.bf16.mxu0 %v3480_v0 }
0x279a   :  { %2865 = vmatmul.mubr.msk.f32.vlgmr.msra.gmra.mrb[18].mxu0 %vm2109_vm6, %v2100_v41 }
0x279b   :  { %2871 = vmatprep.mubr.msk.f32.mxu0 %vm3481_vm0, %v3482_v1  ;;  %3002 = vmatpush3.bf16.msra.mxu0 %v3001_v53 }
0x279c   :  { %3009 = vmatprep.subr.bf16.mxu0 %v3480_v0 }
0x2869   :  { %v1958_v3 = vpop.f32.mrb[16].mxu0 }
0x286a   :  { %v1963_v4 = vrot.slane %v1958_v3, 4  ;;  %v2850_v6 = vpop.f32.mrb[17].mxu0 }
0x286c   :  { %v1965_v7 = vadd.f32 %v1963_v4, %v3929_v9 }
0x286d   :  { %v2182_v54 = vpop.f32.mrb[18].mxu0 }
0x286e   :  { %3148 = vtanh.f32 %v1965_v7  ;;  %v2549_v11 = vmul.f32 -1.442695, %v1965_v7  ;;  %v2866_v56 = vpop.f32.mrb[19].mxu0  ;;  %v2183_v35 = vadd.f32 %v2552_v55, %v2182_v54 }
0x2870   :  { %3150 = vpow2.f32 %v2549_v11  ;;  %v2208_v61 = vmul.f32 0.999995, %v2183_v35 }
0x2872   :  { %v2216_v59 = vmul.f32 %v2557_v57, %v2208_v61 }
0x2874   :  { %v2224_v5 = vadd.f32 %v2558_v60, %v2216_v59 }
0x2876   :  { %v2225_v62 = vmax.f32 %v2224_v5, 0.0 }
0x2878   :  { %v3149_v8 = vpop.eup %3148  ;;  %2872 = vmatmul.mubr.msk.f32.vlgmr.msra.gmra.mrb[20].mxu0 %vm2232_vm7, %v2225_v62 }
0x2879   :  { %1978 = vrot.lane.b32.xlu1 %v3149_v8, %s3483_s3  ;;  %2893 = vmatprep.mubr.msk.f32.mxu0 %vm3481_vm0, %v3482_v1 }
0x287a   :  { %v3151_v14 = vpop.eup %3150 }
0x287b   :  { %v1969_v16 = vadd.f32 1.0, %v3151_v14 }
0x287d   :  { %3152 = vrcp.f32 %v1969_v16 }
0x2887   :  { %v3153_v17 = vpop.eup %3152 }
0x2888   :  { %v1976_v21 = vmul.f32 %v3153_v17, %v1974_v20  ;;  %v2410_v20 = vld [vmem:[%s4095_s19 + $0x10] sm:$0xff] }
0x28eb   :  { %v1979_v18 = vpop.permute.xlu1 %1978 }
0x28ec   :  { %v1981_v19 = vmul.f32 %v3153_v17, %v1979_v18  ;;  %v2408_v18 = vld [vmem:[%s4095_s19] sm:$0xff] }
0x28ee   :  { %1983 = vrot.lane.b32.xlu0 %v1981_v19, %s3484_s23 }
0x294b   :  { %v2302_v16 = vpop.f32.mrb[20].mxu0 }
0x2960   :  { %v1984_v22 = vpop.permute.xlu0 %1983 }
0x2961   :  { %v1986_v23 = vadd.f32 %v1984_v22, %v1976_v21  ;;  %v2411_v21 = vld [vmem:[%s4095_s19 + $0x18] sm:$0xff] }
0x2962   :  { %v3013_v22 = vpack.c.bf16 %v2411_v21, %v2410_v20 }
0x2963   :  { %3154 = vtanh.f32 %v1986_v23 }
0x296d   :  { %v3155_v24 = vpop.eup %3154 }
0x296e   :  { %1989 = vrot.lane.b32.xlu1 %v3155_v24, %s3483_s3  ;;  %v2561_v24 = vld [vmem:[#allocation20] ss:$0 sm:$0xff] }
0x29e0   :  { %v1990_v25 = vpop.permute.xlu1 %1989 }
0x29e1   :  { %v1992_v26 = vmul.f32 %v3153_v17, %v1990_v25  ;;  %v2873_v17 = vpop.f32.mrb[21].mxu0 }
0x29e3   :  { %v1994_v12 = vrot.slane %v1992_v26, 4 }
0x29e5   :  { %1995 = vrot.lane.b32.xlu0 %v1994_v12, %s3484_s23 }
0x2a57   :  { %v1996_v27 = vpop.permute.xlu0 %1995 }
0x2a58   :  { %2860 = vmatmul.mubr.msk.f32.vlgmr.msra.gmra.mrb[16].mxu1 %vm310_vm3, %v1996_v27  ;;  %v2562_v27 = vld [vmem:[%s4093_s17] ss:$0 sm:$0xff] }
0x2a59   :  { %2882 = vmatprep.mubr.msk.f32.mxu1 %vm3481_vm0, %v3482_v1  ;;  %3005 = vmatpush3.bf16.msra.mxu1 %v3004_v13  ;;  %v2409_v1 = vld [vmem:[%s4095_s19 + $0x8] sm:$0xff] }
0x2a5a   :  { %3006 = vmatprep.subr.bf16.mxu1 %v3480_v0  ;;  %v3010_v19 = vpack.c.bf16 %v2409_v1, %v2408_v18 }
0x2a5c   :  { %3011 = vmatpush3.bf16.msra.mxu0 %v3010_v19 }
0x2a5d   :  { %3008 = vmatpush3.bf16.msra.mxu1 %v3007_v58  ;;  %3012 = vmatprep.subr.bf16.mxu0 %v3480_v0 }
0x2a60   :  { %3014 = vmatpush3.bf16.msra.mxu0 %v3013_v22 }
0x2b2b   :  { %v2065_v28 = vpop.f32.mrb[16].mxu1 }
0x2b2c   :  { %v2070_v29 = vrot.slane %v2065_v28, 2  ;;  %v2861_v30 = vpop.f32.mrb[17].mxu1  ;;  %v2563_v28 = vld [vmem:[%s4094_s18] ss:$0 sm:$0xff] }
0x2b2e   :  { %v2072_v31 = vadd.f32 %v2070_v29, %v3929_v9  ;;  %v2081_v9 = vrot.slane %v1986_v23, 6 }
0x2b30   :  { %3156 = vtanh.f32 %v2072_v31  ;;  %v2551_v32 = vmul.f32 -1.442695, %v2072_v31 }
0x2b32   :  { %3158 = vpow2.f32 %v2551_v32 }
0x2b3a   :  { %v3157_v15 = vpop.eup %3156 }
0x2b3b   :  { %2085 = vrot.lane.b32.xlu1 %v3157_v15, %s3483_s3  ;;  %v2564_v15 = vld [vmem:[%s4096_s20] ss:$0 sm:$0xff] }
0x2b3c   :  { %v3159_v33 = vpop.eup %3158 }
0x2b3d   :  { %v2076_v34 = vadd.f32 1.0, %v3159_v33 }
0x2b3f   :  { %3160 = vrcp.f32 %v2076_v34 }
0x2b49   :  { %v3161_v36 = vpop.eup %3160 }
0x2b4a   :  { %v2083_v42 = vmul.f32 %v3161_v36, %v2081_v9 }
0x2bad   :  { %v2086_v37 = vpop.permute.xlu1 %2085 }
0x2bae   :  { %v2088_v38 = vmul.f32 %v3161_v36, %v2086_v37 }
0x2bb0   :  { %2090 = vrot.lane.b32.xlu0 %v2088_v38, %s3484_s23 }
0x2bb4   :  { %2193 = vrot.lane.b32.xlu0 %v2555_v39, %s3485_s16 }
0x2c22   :  { %v2091_v43 = vpop.permute.xlu0 %2090 }
0x2c23   :  { %v2093_v44 = vadd.f32 %v2091_v43, %v2083_v42 }
0x2c25   :  { %3162 = vtanh.f32 %v2093_v44 }
0x2c26   :  { %v2194_v10 = vpop.permute.xlu0 %2193 }
0x2c2f   :  { %v3163_v45 = vpop.eup %3162 }
0x2c30   :  { %2096 = vrot.lane.b32.xlu1 %v3163_v45, %s3483_s3 }
0x2c34   :  { %2203 = vrot.lane.b32.xlu1 %v2556_v46, %s3485_s16  ;;  %s2500_s16 = sshll.u32 %s3486_s5, 4  ;;  %s2501_s16 = int_to_ptr.vmem [resolvable:$true] %s2500_s16 }
0x2c35   :  { %s3428_s17 = scalar_lea.vmem %s2501_s16, 32  ;;  %p3433_p13 = scmp.lt.s32.totalorder %s2501_s16, %s2501_s16 }
0x2c36   :  { %p3429_p12 = scmp.ne.s32.totalorder %s2501_s16, %s3428_s17  ;;  %p3434_p0 = scmp.lt.s32.totalorder %s3428_s17, %s3428_s17 }
0x2c38   :  { %p3435_p1 = por %p3434_p0, %p3433_p13 }
0x2c3a   :  { %p3436_p2 = pnand %p3435_p1, %p3429_p12 }
0x2ca2   :  { %v2097_v63 = vpop.permute.xlu1 %2096 }
0x2ca3   :  { %v2099_v2 = vmul.f32 %v3161_v36, %v2097_v63 }
0x2ca5   :  { %v2186_v3 = vmul.f32 0.999995, %v2099_v2 }
0x2ca6   :  { %v2204_v4 = vpop.permute.xlu1 %2203 }
0x2ca7   :  { %v2196_v6 = vmul.f32 %v2194_v10, %v2186_v3 }
0x2ca9   :  { %v2206_v7 = vadd.f32 %v2204_v4, %v2196_v6 }
0x2cab   :  { %v2207_v8 = vmax.f32 %v2206_v7, 0.0 }
0x2cad   :  { %v2307_v11 = vrot.slane %v2207_v8, 6 }
0x2caf   :  { %2308 = vrot.lane.b32.xlu0 %v2307_v11, %s3484_s23 }
0x2d21   :  { %v2309_v14 = vpop.permute.xlu0 %2308 }
0x2d22   :  { %2883 = vmatmul.mubr.msk.f32.vlgmr.msra.gmra.mrb[18].mxu1 %vm310_vm3, %v2309_v14 }
0x2df5   :  { %v2378_v23 = vpop.f32.mrb[18].mxu1 }
0x2df6   :  { %v2379_v25 = vadd.f32 %v2378_v23, %v2302_v16  ;;  %v2884_v26 = vpop.f32.mrb[19].mxu1 }
0x2df8   :  { %v2389_v12 = vadd.f32 %v2561_v24, %v2379_v25 }
0x2dfa   :  { %v2390_v0 = vmul.f32 0.999995, %v2389_v12 }
0x2dfc   :  { %v2398_v29 = vmul.f32 %v2562_v27, %v2390_v0 }
0x2dfe   :  { %v2406_v30 = vadd.f32 %v2563_v28, %v2398_v29 }
0x2e00   :  { %v2407_v31 = vmax.f32 %v2406_v30, 0.0 }
0x2e02   :  { %2894 = vmatmul.mubr.msk.f32.vlgmr.msra.gmra.mrb[22].mxu0 %vm310_vm3, %v2407_v31 }
0x2ed5   :  { %v2488_v32 = vpop.f32.mrb[22].mxu0 }
0x2ed6   :  { %v2489_v33 = vadd.f32 %v2564_v15, %v2488_v32  ;;  %v2895_v34 = vpop.f32.mrb[23].mxu0 }
0x2ed8   :  { %2493 = vst.msk [vmem:[#allocation22] sm:$0x3] %vm2492_vm8, %v2489_v33 }
0x2ed9   :  { %3439 = shalt.err (!%p3436_p2)
}
0x2eda   :  { %s4118_s25 = sld [smem:[#allocation37_spill]] }
0x2ee0   :  { %s3440_s29 = scalar_lea.hbm %s4118_s25, 32 }
0x2ee1   :  { %p3441_p3 = scmp.ne.s32.totalorder %s4118_s25, %s3440_s29  ;;  %p3444_p4 = scmp.lt.u32.totalorder %s3440_s29, %s4118_s25 }
0x2ee3   :  { %p3446_p5 = pnand %p3444_p4, %p3441_p3 }
0x2ee5   :  { %3449 = shalt.err (!%p3446_p5)
}
0x2ee6   :  { %2503 = dma.vmem_to_hbm [thread:$0]  %s2501_s16, 32, %s4118_s25, [#allocation4]  }
0x2ee7   :  { %3464 = dma.done.wait [#allocation4], 32  }
0x2ee8   :  { %3465 = vsyncadd [#allocation4], 4294967264 }
0x2ee9   :  { %2507 = vsyncpa [#allocation3], 1 }
0x2eea   :  { %2508 = vsyncpa [#allocation6], 1 }
0x2eeb   :  { %2509 = vsyncpa [#allocation9], 1 }
0x2eec   :  { %2510 = vsyncpa [#allocation12], 1 }
0x2eed   :  { %2511 = vsyncpa [#allocation15], 1 }
0x2eee   :  { %2512 = vsyncpa [#allocation18], 1 }
0x2eef   :  { %2513 = vsyncpa [#allocation21], 1 }
0x2ef0   :  { %2514 = vsyncpa [#allocation4], 1 }

</bundles_post_ra>
